<compile_context>
chip_gen: v6e
topology: v6e:2x2x1
jax: 0.10.0
libtpu: 0.0.40
codegen_flags: <defaults>
</compile_context>

<pallas_src>
import jax
import jax.numpy as jnp
from jax.experimental import pallas as pl
from jax.experimental.pallas import tpu as pltpu

HIDDEN_DIMS = (512, 256, 128, 128, 64)
NUM_CLASSES = 10


def _round_up(x, m):
    return (x + m - 1) // m * m


def _mlp_kernel(x_ref,
                w1, b1, w2, b2, w3, b3, w4, b4, w5, b5, w6, b6,
                out_ref):
    """x_ref: (TB, D0) bf16; weights bf16 (VMEM-resident across batch tiles);
    biases f32; out_ref: (TB, C_pad) f32."""
    # TODO(synk): nn.Dropout(0.3) is identity in eval/inference mode; the
    # training-mode random mask is intentionally not applied here.

    def hidden(h, w_ref, b_ref):
        acc = jnp.dot(h, w_ref[...], preferred_element_type=jnp.float32)
        return jnp.maximum(acc + b_ref[...], 0.0).astype(jnp.bfloat16)

    h = x_ref[...]
    h = hidden(h, w1, b1)
    h = hidden(h, w2, b2)
    h = hidden(h, w3, b3)
    h = hidden(h, w4, b4)
    h = hidden(h, w5, b5)
    logits = jnp.dot(h, w6[...], preferred_element_type=jnp.float32) + b6[...]
    out_ref[...] = logits


def mlp_forward(x, params):
    """x: [B, input_dim] (any trailing dims are flattened). Returns [B, 10] f32 logits."""
    B = x.shape[0]
    x2d = x.reshape(B, -1)
    input_dim = x2d.shape[1]

    dims = (input_dim,) + HIDDEN_DIMS + (NUM_CLASSES,)
    dims_pad = tuple(_round_up(d, 128) for d in dims)
    n_layers = len(dims) - 1

    # Batch tiling: at small B this is a single grid step; at large B the
    # batch axis pipelines activation tiles against resident weights and is
    # marked "parallel" so v7x's two TensorCores split it.
    TB = min(256, _round_up(B, 8))
    Bp = _round_up(B, TB)
    n_tiles = Bp // TB

    # Zero-pad input to lane-dense shape and cast MXU operand to bf16.
    xp = jnp.zeros((Bp, dims_pad[0]), jnp.bfloat16)
    xp = xp.at[:B, :input_dim].set(x2d.astype(jnp.bfloat16))

    args = [xp]
    in_specs = [pl.BlockSpec((TB, dims_pad[0]), lambda i: (i, 0))]
    weight_bytes = 0
    for li in range(n_layers):
        w = params[f"w{li + 1}"]
        b = params[f"b{li + 1}"]
        # Zero-padding keeps semantics exact: padded activation columns are
        # ReLU(0)=0 and padded weight rows/cols are 0.
        wp = jnp.zeros((dims_pad[li], dims_pad[li + 1]), jnp.bfloat16)
        wp = wp.at[:dims[li], :dims[li + 1]].set(w.astype(jnp.bfloat16))
        bp = jnp.zeros((1, dims_pad[li + 1]), jnp.float32)
        bp = bp.at[:, :dims[li + 1]].set(b)
        args += [wp, bp]
        in_specs += [
            pl.BlockSpec((dims_pad[li], dims_pad[li + 1]), lambda i: (0, 0)),
            pl.BlockSpec((1, dims_pad[li + 1]), lambda i: (0, 0)),
        ]
        weight_bytes += wp.size * 2 + bp.size * 4

    out_spec = pl.BlockSpec((TB, dims_pad[-1]), lambda i: (i, 0))
    out_shape = jax.ShapeDtypeStruct((Bp, dims_pad[-1]), jnp.float32)

    flops = 2 * Bp * sum(dims_pad[i] * dims_pad[i + 1] for i in range(n_layers))
    bytes_accessed = weight_bytes + xp.size * 2 + Bp * dims_pad[-1] * 4

    logits_pad = pl.pallas_call(
        _mlp_kernel,
        out_shape=out_shape,
        grid=(n_tiles,),
        in_specs=in_specs,
        out_specs=out_spec,
        compiler_params=pltpu.CompilerParams(
            dimension_semantics=("parallel",),
            vmem_limit_bytes=32 << 20,
        ),
        cost_estimate=pl.CostEstimate(
            flops=flops, transcendentals=0, bytes_accessed=bytes_accessed),
    )(*args)
    return logits_pad[:B, :NUM_CLASSES]


def _init_linear(key, fan_in, fan_out):
    """PyTorch nn.Linear default init: U(-1/sqrt(fan_in), 1/sqrt(fan_in))."""
    kw, kb = jax.random.split(key)
    bound = 1.0 / jnp.sqrt(jnp.float32(fan_in))
    w = jax.random.uniform(kw, (fan_in, fan_out), jnp.float32, -bound, bound)
    b = jax.random.uniform(kb, (1, fan_out), jnp.float32, -bound, bound)
    return w, b


def make_params(key, input_dim):
    dims = (input_dim,) + HIDDEN_DIMS + (NUM_CLASSES,)
    keys = jax.random.split(key, len(dims) - 1)
    params = {}
    for i in range(len(dims) - 1):
        w, b = _init_linear(keys[i], dims[i], dims[i + 1])
        params[f"w{i + 1}"] = w
        params[f"b{i + 1}"] = b
    return params


def _reference(x, params):
    """Pure-JAX reference mirroring the kernel's bf16/f32-accum dtype policy."""
    h = x.reshape(x.shape[0], -1).astype(jnp.bfloat16)
    n_layers = len(HIDDEN_DIMS) + 1
    for i in range(n_layers):
        w = params[f"w{i + 1}"].astype(jnp.bfloat16)
        b = params[f"b{i + 1}"]
        acc = jnp.dot(h, w, preferred_element_type=jnp.float32) + b
        if i < n_layers - 1:
            h = jnp.maximum(acc, 0.0).astype(jnp.bfloat16)
        else:
            out = acc
    return out


if __name__ == "__main__":
    key = jax.random.PRNGKey(0)
    k_x, k_params = jax.random.split(key)

    B, input_dim = 2, 1024
    x = jax.random.normal(k_x, (B, input_dim), jnp.float32)
    params = make_params(k_params, input_dim)

    logits = mlp_forward(x, params)
    jax.block_until_ready(logits)

    ref = _reference(x, params)
    assert logits.shape == (B, NUM_CLASSES)
    assert jnp.allclose(logits, ref, atol=2e-2, rtol=2e-2), (
        float(jnp.max(jnp.abs(logits - ref))))

    print("KERNEL_OK")
</pallas_src>

<mosaic_0001>
module attributes {stable_mosaic.version = 11 : i64} {
  func.func @_mlp_kernel(%arg0: i32, %arg1: memref<8x1024xbf16, #tpu.memory_space<vmem>>, %arg2: memref<1024x512xbf16, #tpu.memory_space<vmem>>, %arg3: memref<1x512xf32, #tpu.memory_space<vmem>>, %arg4: memref<512x256xbf16, #tpu.memory_space<vmem>>, %arg5: memref<1x256xf32, #tpu.memory_space<vmem>>, %arg6: memref<256x128xbf16, #tpu.memory_space<vmem>>, %arg7: memref<1x128xf32, #tpu.memory_space<vmem>>, %arg8: memref<128x128xbf16, #tpu.memory_space<vmem>>, %arg9: memref<1x128xf32, #tpu.memory_space<vmem>>, %arg10: memref<128x128xbf16, #tpu.memory_space<vmem>>, %arg11: memref<1x128xf32, #tpu.memory_space<vmem>>, %arg12: memref<128x128xbf16, #tpu.memory_space<vmem>>, %arg13: memref<1x128xf32, #tpu.memory_space<vmem>>, %arg14: memref<8x128xf32, #tpu.memory_space<vmem>>) attributes {dimension_semantics = [#tpu.dimension_semantics<parallel>], iteration_bounds = array<i64: 1>, scalar_prefetch = 0 : i64, scratch_operands = 0 : i64, tpu.core_type = #tpu.core_type<tc>, window_params = [{transform_indices = @transform_0, window_bounds = array<i64: 8, 1024>}, {pipeline_mode = #tpu.pipeline_mode<synchronous>, transform_indices = @transform_1, window_bounds = array<i64: 1024, 512>}, {pipeline_mode = #tpu.pipeline_mode<synchronous>, transform_indices = @transform_2, window_bounds = array<i64: 1, 512>}, {pipeline_mode = #tpu.pipeline_mode<synchronous>, transform_indices = @transform_3, window_bounds = array<i64: 512, 256>}, {pipeline_mode = #tpu.pipeline_mode<synchronous>, transform_indices = @transform_4, window_bounds = array<i64: 1, 256>}, {pipeline_mode = #tpu.pipeline_mode<synchronous>, transform_indices = @transform_5, window_bounds = array<i64: 256, 128>}, {pipeline_mode = #tpu.pipeline_mode<synchronous>, transform_indices = @transform_6, window_bounds = array<i64: 1, 128>}, {pipeline_mode = #tpu.pipeline_mode<synchronous>, transform_indices = @transform_7, window_bounds = array<i64: 128, 128>}, {pipeline_mode = #tpu.pipeline_mode<synchronous>, transform_indices = @transform_8, window_bounds = array<i64: 1, 128>}, {pipeline_mode = #tpu.pipeline_mode<synchronous>, transform_indices = @transform_9, window_bounds = array<i64: 128, 128>}, {pipeline_mode = #tpu.pipeline_mode<synchronous>, transform_indices = @transform_10, window_bounds = array<i64: 1, 128>}, {pipeline_mode = #tpu.pipeline_mode<synchronous>, transform_indices = @transform_11, window_bounds = array<i64: 128, 128>}, {pipeline_mode = #tpu.pipeline_mode<synchronous>, transform_indices = @transform_12, window_bounds = array<i64: 1, 128>}, {transform_indices = @transform_13, window_bounds = array<i64: 8, 128>}]} {
    %c0 = arith.constant 0 : index
    %c0_0 = arith.constant 0 : index
    %0 = vector.load %arg1[%c0, %c0_0] : memref<8x1024xbf16, #tpu.memory_space<vmem>>, vector<8x1024xbf16>
    %c0_1 = arith.constant 0 : index
    %c0_2 = arith.constant 0 : index
    %1 = vector.load %arg2[%c0_1, %c0_2] : memref<1024x512xbf16, #tpu.memory_space<vmem>>, vector<1024x512xbf16>
    %cst = arith.constant dense<0.000000e+00> : vector<8x512xf32>
    %2 = tpu.matmul %0, %1, %cst {dimension_numbers = #tpu.dot_dimension_numbers<[1], [0], [0], [1], [0, 0, 1, 1], [], []>} : vector<8x1024xbf16>, vector<1024x512xbf16>, vector<8x512xf32> -> vector<8x512xf32>
    %c0_3 = arith.constant 0 : index
    %c0_4 = arith.constant 0 : index
    %3 = vector.load %arg3[%c0_3, %c0_4] : memref<1x512xf32, #tpu.memory_space<vmem>>, vector<1x512xf32>
    %4 = vector.broadcast %3 : vector<1x512xf32> to vector<8x512xf32>
    %5 = arith.addf %2, %4 : vector<8x512xf32>
    %cst_5 = arith.constant 0.000000e+00 : f32
    %6 = vector.broadcast %cst_5 : f32 to vector<8x512xf32>
    %7 = arith.maximumf %5, %6 : vector<8x512xf32>
    %8 = arith.truncf %7 : vector<8x512xf32> to vector<8x512xbf16>
    %c0_6 = arith.constant 0 : index
    %c0_7 = arith.constant 0 : index
    %9 = vector.load %arg4[%c0_6, %c0_7] : memref<512x256xbf16, #tpu.memory_space<vmem>>, vector<512x256xbf16>
    %cst_8 = arith.constant dense<0.000000e+00> : vector<8x256xf32>
    %10 = tpu.matmul %8, %9, %cst_8 {dimension_numbers = #tpu.dot_dimension_numbers<[1], [0], [0], [1], [0, 0, 1, 1], [], []>} : vector<8x512xbf16>, vector<512x256xbf16>, vector<8x256xf32> -> vector<8x256xf32>
    %c0_9 = arith.constant 0 : index
    %c0_10 = arith.constant 0 : index
    %11 = vector.load %arg5[%c0_9, %c0_10] : memref<1x256xf32, #tpu.memory_space<vmem>>, vector<1x256xf32>
    %12 = vector.broadcast %11 : vector<1x256xf32> to vector<8x256xf32>
    %13 = arith.addf %10, %12 : vector<8x256xf32>
    %cst_11 = arith.constant 0.000000e+00 : f32
    %14 = vector.broadcast %cst_11 : f32 to vector<8x256xf32>
    %15 = arith.maximumf %13, %14 : vector<8x256xf32>
    %16 = arith.truncf %15 : vector<8x256xf32> to vector<8x256xbf16>
    %c0_12 = arith.constant 0 : index
    %c0_13 = arith.constant 0 : index
    %17 = vector.load %arg6[%c0_12, %c0_13] : memref<256x128xbf16, #tpu.memory_space<vmem>>, vector<256x128xbf16>
    %cst_14 = arith.constant dense<0.000000e+00> : vector<8x128xf32>
    %18 = tpu.matmul %16, %17, %cst_14 {dimension_numbers = #tpu.dot_dimension_numbers<[1], [0], [0], [1], [0, 0, 1, 1], [], []>} : vector<8x256xbf16>, vector<256x128xbf16>, vector<8x128xf32> -> vector<8x128xf32>
    %c0_15 = arith.constant 0 : index
    %c0_16 = arith.constant 0 : index
    %19 = vector.load %arg7[%c0_15, %c0_16] : memref<1x128xf32, #tpu.memory_space<vmem>>, vector<1x128xf32>
    %20 = vector.broadcast %19 : vector<1x128xf32> to vector<8x128xf32>
    %21 = arith.addf %18, %20 : vector<8x128xf32>
    %cst_17 = arith.constant 0.000000e+00 : f32
    %22 = vector.broadcast %cst_17 : f32 to vector<8x128xf32>
    %23 = arith.maximumf %21, %22 : vector<8x128xf32>
    %24 = arith.truncf %23 : vector<8x128xf32> to vector<8x128xbf16>
    %c0_18 = arith.constant 0 : index
    %c0_19 = arith.constant 0 : index
    %25 = vector.load %arg8[%c0_18, %c0_19] : memref<128x128xbf16, #tpu.memory_space<vmem>>, vector<128x128xbf16>
    %cst_20 = arith.constant dense<0.000000e+00> : vector<8x128xf32>
    %26 = tpu.matmul %24, %25, %cst_20 {dimension_numbers = #tpu.dot_dimension_numbers<[1], [0], [0], [1], [0, 0, 1, 1], [], []>} : vector<8x128xbf16>, vector<128x128xbf16>, vector<8x128xf32> -> vector<8x128xf32>
    %c0_21 = arith.constant 0 : index
    %c0_22 = arith.constant 0 : index
    %27 = vector.load %arg9[%c0_21, %c0_22] : memref<1x128xf32, #tpu.memory_space<vmem>>, vector<1x128xf32>
    %28 = vector.broadcast %27 : vector<1x128xf32> to vector<8x128xf32>
    %29 = arith.addf %26, %28 : vector<8x128xf32>
    %cst_23 = arith.constant 0.000000e+00 : f32
    %30 = vector.broadcast %cst_23 : f32 to vector<8x128xf32>
    %31 = arith.maximumf %29, %30 : vector<8x128xf32>
    %32 = arith.truncf %31 : vector<8x128xf32> to vector<8x128xbf16>
    %c0_24 = arith.constant 0 : index
    %c0_25 = arith.constant 0 : index
    %33 = vector.load %arg10[%c0_24, %c0_25] : memref<128x128xbf16, #tpu.memory_space<vmem>>, vector<128x128xbf16>
    %cst_26 = arith.constant dense<0.000000e+00> : vector<8x128xf32>
    %34 = tpu.matmul %32, %33, %cst_26 {dimension_numbers = #tpu.dot_dimension_numbers<[1], [0], [0], [1], [0, 0, 1, 1], [], []>} : vector<8x128xbf16>, vector<128x128xbf16>, vector<8x128xf32> -> vector<8x128xf32>
    %c0_27 = arith.constant 0 : index
    %c0_28 = arith.constant 0 : index
    %35 = vector.load %arg11[%c0_27, %c0_28] : memref<1x128xf32, #tpu.memory_space<vmem>>, vector<1x128xf32>
    %36 = vector.broadcast %35 : vector<1x128xf32> to vector<8x128xf32>
    %37 = arith.addf %34, %36 : vector<8x128xf32>
    %cst_29 = arith.constant 0.000000e+00 : f32
    %38 = vector.broadcast %cst_29 : f32 to vector<8x128xf32>
    %39 = arith.maximumf %37, %38 : vector<8x128xf32>
    %40 = arith.truncf %39 : vector<8x128xf32> to vector<8x128xbf16>
    %c0_30 = arith.constant 0 : index
    %c0_31 = arith.constant 0 : index
    %41 = vector.load %arg12[%c0_30, %c0_31] : memref<128x128xbf16, #tpu.memory_space<vmem>>, vector<128x128xbf16>
    %cst_32 = arith.constant dense<0.000000e+00> : vector<8x128xf32>
    %42 = tpu.matmul %40, %41, %cst_32 {dimension_numbers = #tpu.dot_dimension_numbers<[1], [0], [0], [1], [0, 0, 1, 1], [], []>} : vector<8x128xbf16>, vector<128x128xbf16>, vector<8x128xf32> -> vector<8x128xf32>
    %c0_33 = arith.constant 0 : index
    %c0_34 = arith.constant 0 : index
    %43 = vector.load %arg13[%c0_33, %c0_34] : memref<1x128xf32, #tpu.memory_space<vmem>>, vector<1x128xf32>
    %44 = vector.broadcast %43 : vector<1x128xf32> to vector<8x128xf32>
    %45 = arith.addf %42, %44 : vector<8x128xf32>
    %c0_35 = arith.constant 0 : index
    %c0_36 = arith.constant 0 : index
    %46 = vector.load %arg14[%c0_35, %c0_36] : memref<8x128xf32, #tpu.memory_space<vmem>>, vector<8x128xf32>
    tpu.vector_store %arg14[%c0_35, %c0_36], %45 {strides = array<i32>} : memref<8x128xf32, #tpu.memory_space<vmem>>, vector<8x128xf32>,
    return
  }
  func.func @transform_0(%arg0: i32) -> (i32, i32) {
    %c0_i32 = arith.constant 0 : i32
    %c0_i32_0 = arith.constant 0 : i32
    return %arg0, %c0_i32 : i32, i32
  }
  func.func @transform_1(%arg0: i32) -> (i32, i32) {
    %c0_i32 = arith.constant 0 : i32
    %c0_i32_0 = arith.constant 0 : i32
    %c0_i32_1 = arith.constant 0 : i32
    return %c0_i32, %c0_i32_0 : i32, i32
  }
  func.func @transform_2(%arg0: i32) -> (i32, i32) {
    %c0_i32 = arith.constant 0 : i32
    %c0_i32_0 = arith.constant 0 : i32
    %c0_i32_1 = arith.constant 0 : i32
    return %c0_i32, %c0_i32_0 : i32, i32
  }
  func.func @transform_3(%arg0: i32) -> (i32, i32) {
    %c0_i32 = arith.constant 0 : i32
    %c0_i32_0 = arith.constant 0 : i32
    %c0_i32_1 = arith.constant 0 : i32
    return %c0_i32, %c0_i32_0 : i32, i32
  }
  func.func @transform_4(%arg0: i32) -> (i32, i32) {
    %c0_i32 = arith.constant 0 : i32
    %c0_i32_0 = arith.constant 0 : i32
    %c0_i32_1 = arith.constant 0 : i32
    return %c0_i32, %c0_i32_0 : i32, i32
  }
  func.func @transform_5(%arg0: i32) -> (i32, i32) {
    %c0_i32 = arith.constant 0 : i32
    %c0_i32_0 = arith.constant 0 : i32
    %c0_i32_1 = arith.constant 0 : i32
    return %c0_i32, %c0_i32_0 : i32, i32
  }
  func.func @transform_6(%arg0: i32) -> (i32, i32) {
    %c0_i32 = arith.constant 0 : i32
    %c0_i32_0 = arith.constant 0 : i32
    %c0_i32_1 = arith.constant 0 : i32
    return %c0_i32, %c0_i32_0 : i32, i32
  }
  func.func @transform_7(%arg0: i32) -> (i32, i32) {
    %c0_i32 = arith.constant 0 : i32
    %c0_i32_0 = arith.constant 0 : i32
    %c0_i32_1 = arith.constant 0 : i32
    return %c0_i32, %c0_i32_0 : i32, i32
  }
  func.func @transform_8(%arg0: i32) -> (i32, i32) {
    %c0_i32 = arith.constant 0 : i32
    %c0_i32_0 = arith.constant 0 : i32
    %c0_i32_1 = arith.constant 0 : i32
    return %c0_i32, %c0_i32_0 : i32, i32
  }
  func.func @transform_9(%arg0: i32) -> (i32, i32) {
    %c0_i32 = arith.constant 0 : i32
    %c0_i32_0 = arith.constant 0 : i32
    %c0_i32_1 = arith.constant 0 : i32
    return %c0_i32, %c0_i32_0 : i32, i32
  }
  func.func @transform_10(%arg0: i32) -> (i32, i32) {
    %c0_i32 = arith.constant 0 : i32
    %c0_i32_0 = arith.constant 0 : i32
    %c0_i32_1 = arith.constant 0 : i32
    return %c0_i32, %c0_i32_0 : i32, i32
  }
  func.func @transform_11(%arg0: i32) -> (i32, i32) {
    %c0_i32 = arith.constant 0 : i32
    %c0_i32_0 = arith.constant 0 : i32
    %c0_i32_1 = arith.constant 0 : i32
    return %c0_i32, %c0_i32_0 : i32, i32
  }
  func.func @transform_12(%arg0: i32) -> (i32, i32) {
    %c0_i32 = arith.constant 0 : i32
    %c0_i32_0 = arith.constant 0 : i32
    %c0_i32_1 = arith.constant 0 : i32
    return %c0_i32, %c0_i32_0 : i32, i32
  }
  func.func @transform_13(%arg0: i32) -> (i32, i32) {
    %c0_i32 = arith.constant 0 : i32
    %c0_i32_0 = arith.constant 0 : i32
    return %arg0, %c0_i32 : i32, i32
  }
}

</mosaic_0001>

<bundles_post_ra>
// kernel: tpu_custom_call.1
= control target key start
LH: loop header
LB: loop body
LE: loop exit
PB: predicated region body
PF: predicated region fallthrough
CT: control target
= control target key end

     0   :  { %18 = vsyncpa [#allocation3], 0  ;;  %s4558_s0 = inlined_call_operand.hbm [shape: bf16[8,1024], index: 0, kind: input, shape index: {}]   ;;  %s4559_s1 = inlined_call_operand.hbm [shape: bf16[1024,512], index: 1, kind: input, shape index: {}]   ;;  %s4560_s2 = inlined_call_operand.hbm [shape: f32[1,512], index: 2, kind: input, shape index: {}]   ;;  %s4561_s3 = inlined_call_operand.hbm [shape: bf16[512,256], index: 3, kind: input, shape index: {}]   ;;  %s4562_s4 = inlined_call_operand.vmem [shape: f32[1,256], index: 4, kind: input, shape index: {}]   ;;  %s4563_s5 = inlined_call_operand.hbm [shape: bf16[256,128], index: 5, kind: input, shape index: {}]   ;;  %s4564_s6 = inlined_call_operand.vmem [shape: f32[1,128], index: 6, kind: input, shape index: {}]   ;;  %s4565_s7 = inlined_call_operand.hbm [shape: bf16[128,128], index: 7, kind: input, shape index: {}]   ;;  %s4566_s8 = inlined_call_operand.vmem [shape: f32[1,128], index: 8, kind: input, shape index: {}]   ;;  %s4567_s9 = inlined_call_operand.hbm [shape: bf16[128,128], index: 9, kind: input, shape index: {}]   ;;  %s4568_s10 = inlined_call_operand.vmem [shape: f32[1,128], index: 10, kind: input, shape index: {}]   ;;  %s4569_s11 = inlined_call_operand.hbm [shape: bf16[128,128], index: 11, kind: input, shape index: {}]   ;;  %s4570_s12 = inlined_call_operand.vmem [shape: f32[1,128], index: 12, kind: input, shape index: {}]   ;;  %s4571_s13 = inlined_call_operand.hbm [shape: f32[8,128], index: 13, kind: output, shape index: {}]  }
   0x1   :  { %19 = vsyncpa [#allocation6], 0 }
   0x2   :  { %20 = vsyncpa [#allocation9], 0 }
   0x3   :  { %21 = vsyncpa [#allocation12], 0 }
   0x4   :  { %22 = vsyncpa [#allocation15], 0 }
   0x5   :  { %23 = vsyncpa [#allocation4], 0  ;;  %s4311_s25 = smov [#allocation5]  }
   0x6   :  { %s39_s26 = sshll.u32 %s4311_s25, 4  ;;  %s40_s26 = int_to_ptr.vmem [resolvable:$true] %s39_s26 }
   0x7   :  { %s4127_s27 = scalar_lea.vmem %s40_s26, 32768  ;;  %p4132_p1 = scmp.lt.s32.totalorder %s40_s26, %s40_s26 }
   0x8   :  { %p4128_p0 = scmp.ne.s32.totalorder %s40_s26, %s4127_s27  ;;  %p4133_p2 = scmp.lt.s32.totalorder %s4127_s27, %s4127_s27 }
   0xa   :  { %p4134_p3 = por %p4133_p2, %p4132_p1 }
   0xc   :  { %p4135_p4 = pnand %p4134_p3, %p4128_p0 }
   0xe   :  { %4138 = shalt.err (!%p4135_p4)
}
   0xf   :  { %s4312_s28 = smov 256   ;;  %s4313_s29 = smov 16  }
  0x10   :  { %45 = dma.hbm_to_vmem [thread:$0]  %s4559_s1, 32768, %s40_s26, [#allocation6], %s4312_s28, %s4312_s28, %s4313_s29  }
  0x11   :  { %s4314_s15 = smov [#allocation8]  }
  0x12   :  { %s61_s16 = sshll.u32 %s4314_s15, 4  ;;  %s62_s16 = int_to_ptr.vmem [resolvable:$true] %s61_s16 }
  0x13   :  { %s4147_s17 = scalar_lea.vmem %s62_s16, 8192  ;;  %p4152_p6 = scmp.lt.s32.totalorder %s62_s16, %s62_s16 }
  0x14   :  { %p4148_p5 = scmp.ne.s32.totalorder %s62_s16, %s4147_s17  ;;  %p4153_p7 = scmp.lt.s32.totalorder %s4147_s17, %s4147_s17 }
  0x16   :  { %p4154_p8 = por %p4153_p7, %p4152_p6 }
  0x18   :  { %p4155_p9 = pnand %p4154_p8, %p4148_p5 }
  0x1a   :  { %4158 = shalt.err (!%p4155_p9)
}
  0x1b   :  { %s4315_s18 = smov 128   ;;  %s4316_s19 = smov 8  }
  0x1c   :  { %67 = dma.hbm_to_vmem [thread:$0]  %s4561_s3, 8192, %s62_s16, [#allocation9], %s4315_s18, %s4315_s18, %s4316_s19  }
  0x1d   :  { %s4317_s22 = smov [#allocation11]   ;;  %s4318_s24 = smov [#allocation2]  }
  0x1e   :  { %s89_s23 = sshll.u32 %s4317_s22, 4  ;;  %s30_s1 = sshll.u32 %s4318_s24, 4  ;;  %s90_s23 = int_to_ptr.vmem [resolvable:$true] %s89_s23  ;;  %s31_s1 = int_to_ptr.vmem [resolvable:$true] %s30_s1 }
  0x1f   :  { %s4167_s25 = scalar_lea.vmem %s90_s23, 1024  ;;  %p4172_p11 = scmp.lt.s32.totalorder %s90_s23, %s90_s23 }
  0x20   :  { %p4168_p10 = scmp.ne.s32.totalorder %s90_s23, %s4167_s25  ;;  %p4173_p12 = scmp.lt.s32.totalorder %s4167_s25, %s4167_s25 }
  0x22   :  { %p4174_p13 = por %p4173_p12, %p4172_p11 }
  0x24   :  { %p4175_p0 = pnand %p4174_p13, %p4168_p10 }
  0x26   :  { %4178 = shalt.err (!%p4175_p0)
}
  0x27   :  { %s4319_s26 = smov 64   ;;  %s4320_s27 = smov 4  }
  0x28   :  { %95 = dma.hbm_to_vmem [thread:$0]  %s4565_s7, 1024, %s90_s23, [#allocation12], %s4319_s26, %s4319_s26, %s4320_s27  }
  0x29   :  { %s4187_s29 = scalar_lea.vmem %s31_s1, 512  ;;  %p4192_p2 = scmp.lt.s32.totalorder %s31_s1, %s31_s1 }
  0x2a   :  { %p4188_p1 = scmp.ne.s32.totalorder %s31_s1, %s4187_s29  ;;  %p4193_p3 = scmp.lt.s32.totalorder %s4187_s29, %s4187_s29 }
  0x2c   :  { %p4194_p4 = por %p4193_p3, %p4192_p2 }
  0x2e   :  { %p4195_p5 = pnand %p4194_p4, %p4188_p1 }
  0x30   :  { %4198 = shalt.err (!%p4195_p5)
}
  0x31   :  { %33 = dma.hbm_to_vmem [thread:$0]  %s4558_s0, 512, %s31_s1, [#allocation3]  }
  0x32   :  { %s4321_s15 = smov [#allocation7]   ;;  %s4322_s17 = smov [#allocation10]  }
  0x33   :  { %s52_s16 = sshll.u32 %s4321_s15, 4  ;;  %s75_s18 = sshll.u32 %s4322_s17, 4  ;;  %s53_s16 = int_to_ptr.vmem [resolvable:$true] %s52_s16  ;;  %s76_s18 = int_to_ptr.vmem [resolvable:$true] %s75_s18 }
  0x34   :  { %s4207_s19 = scalar_lea.vmem %s53_s16, 64  ;;  %p4212_p7 = scmp.lt.s32.totalorder %s53_s16, %s53_s16 }
  0x35   :  { %p4208_p6 = scmp.ne.s32.totalorder %s53_s16, %s4207_s19  ;;  %p4213_p8 = scmp.lt.s32.totalorder %s4207_s19, %s4207_s19 }
  0x37   :  { %p4214_p9 = por %p4213_p8, %p4212_p7 }
  0x39   :  { %p4215_p10 = pnand %p4214_p9, %p4208_p6 }
  0x3b   :  { %4218 = shalt.err (!%p4215_p10)
}
  0x3c   :  { %55 = dma.hbm_to_vmem [thread:$0]  %s4560_s2, 64, %s53_s16, [#allocation6]  }
  0x3d   :  { %s4227_s21 = scalar_lea.vmem %s76_s18, 2048  ;;  %p4232_p12 = scmp.lt.s32.totalorder %s76_s18, %s76_s18 }
  0x3e   :  { %p4228_p11 = scmp.ne.s32.totalorder %s76_s18, %s4227_s21  ;;  %p4233_p13 = scmp.lt.s32.totalorder %s4227_s21, %s4227_s21 }
  0x40   :  { %p4234_p0 = por %p4233_p13, %p4232_p12 }
  0x42   :  { %p4235_p1 = pnand %p4234_p0, %p4228_p11 }
  0x44   :  { %4238 = shalt.err (!%p4235_p1)
}
  0x45   :  { %81 = dma.hbm_to_vmem [thread:$0]  %s4563_s5, 2048, %s76_s18, [#allocation9], %s4319_s26, %s4319_s26, %s4320_s27  }
  0x46   :  { %s4323_s23 = smov [#allocation13]   ;;  %s4324_s1 = smov [#allocation14]  }
  0x47   :  { %s103_s24 = sshll.u32 %s4323_s23, 4  ;;  %s117_s25 = sshll.u32 %s4324_s1, 4  ;;  %s104_s24 = int_to_ptr.vmem [resolvable:$true] %s103_s24  ;;  %s118_s25 = int_to_ptr.vmem [resolvable:$true] %s117_s25 }
  0x48   :  { %s4247_s2 = scalar_lea.vmem %s104_s24, 1024  ;;  %p4252_p3 = scmp.lt.s32.totalorder %s104_s24, %s104_s24 }
  0x49   :  { %p4248_p2 = scmp.ne.s32.totalorder %s104_s24, %s4247_s2  ;;  %p4253_p4 = scmp.lt.s32.totalorder %s4247_s2, %s4247_s2 }
  0x4b   :  { %p4254_p5 = por %p4253_p4, %p4252_p3 }
  0x4d   :  { %p4255_p6 = pnand %p4254_p5, %p4248_p2 }
  0x4f   :  { %4258 = shalt.err (!%p4255_p6)
}
  0x50   :  { %109 = dma.hbm_to_vmem [thread:$0]  %s4567_s9, 1024, %s104_s24, [#allocation12], %s4319_s26, %s4319_s26, %s4320_s27  }
  0x51   :  { %s4267_s5 = scalar_lea.vmem %s118_s25, 1024  ;;  %p4272_p8 = scmp.lt.s32.totalorder %s118_s25, %s118_s25 }
  0x52   :  { %p4268_p7 = scmp.ne.s32.totalorder %s118_s25, %s4267_s5  ;;  %p4273_p9 = scmp.lt.s32.totalorder %s4267_s5, %s4267_s5 }
  0x54   :  { %p4274_p10 = por %p4273_p9, %p4272_p8 }
  0x56   :  { %p4275_p11 = pnand %p4274_p10, %p4268_p7 }
  0x58   :  { %4278 = shalt.err (!%p4275_p11)
}
  0x59   :  { %123 = dma.hbm_to_vmem [thread:$0]  %s4569_s11, 1024, %s118_s25, [#allocation15], %s4319_s26, %s4319_s26, %s4320_s27  }
  0x5a   :  { %4299 = dma.done.wait [#allocation3], 512  }
  0x5b   :  { %4300 = vsyncadd [#allocation3], 4294966784 }
  0x5c   :  { %4301 = dma.done.wait [#allocation6], 32832  }
  0x5d   :  { %4302 = vsyncadd [#allocation6], 4294934464 }
  0x5e   :  { %4303 = dma.done.wait [#allocation9], 10240  }
  0x5f   :  { %4304 = vsyncadd [#allocation9], 4294957056 }
  0x60   :  { %4305 = dma.done.wait [#allocation12], 2048  }
  0x61   :  { %4306 = vsyncadd [#allocation12], 4294965248 }
  0x62   :  { %4307 = dma.done.wait [#allocation15], 1024  }
  0x63   :  { %4308 = vsyncadd [#allocation15], 4294966272  ;;  %v3591_v0 = vld [vmem:[#allocation5 + $0xe4] ss:$16 sps:$4 sm:$0xff]   ;;  %v3595_v2 = vld [vmem:[#allocation5 + $0xe0] ss:$16 sps:$4 sm:$0xff]  }
  0x64   :  { %v3593_v1 = vld [vmem:[#allocation5 + $0x2e4] ss:$16 sps:$4 sm:$0xff]   ;;  %1741 = vmatprep.subr.bf16.mxu0 %v3591_v0  ;;  %v3596_v3 = vld [vmem:[#allocation5 + $0x2e0] ss:$16 sps:$4 sm:$0xff]   ;;  %v152_v48 = vld [vmem:[#allocation2 + $0x8] sm:$0xff]  ;;  %vm4326_vm0 = vmmov 0  }
  0x65   :  { %1782 = vmatprep.subr.bf16.mxu1 %v3593_v1  ;;  %v3597_v4 = vld [vmem:[#allocation5 + $0xc4] ss:$16 sps:$4 sm:$0xff]   ;;  %1742 = vmatpush1.bf16.msra.mxu0 %v3595_v2  ;;  %v3601_v6 = vld [vmem:[#allocation5 + $0xc0] ss:$16 sps:$4 sm:$0xff]   ;;  %v4436_v51 = vcombine.high %v152_v48, %v152_v48  ;;  %s4327_s17 = smov [#allocation16]  }
  0x66   :  { %1783 = vmatpush1.bf16.msra.mxu1 %v3596_v3  ;;  %v3599_v5 = vld [vmem:[#allocation5 + $0x2c4] ss:$16 sps:$4 sm:$0xff]   ;;  %1743 = vmatprep.subr.bf16.mxu0 %v3597_v4  ;;  %v3602_v7 = vld [vmem:[#allocation5 + $0x2c0] ss:$16 sps:$4 sm:$0xff]   ;;  %s3080_s18 = sshll.u32 %s4327_s17, 4  ;;  %s3081_s18 = int_to_ptr.vmem [resolvable:$true] %s3080_s18 }
  0x67   :  { %1784 = vmatprep.subr.bf16.mxu1 %v3599_v5  ;;  %v3603_v8 = vld [vmem:[#allocation5 + $0xa4] ss:$16 sps:$4 sm:$0xff]   ;;  %v3607_v10 = vld [vmem:[#allocation5 + $0xa0] ss:$16 sps:$4 sm:$0xff]   ;;  %1814 = vmatprep.mubr.bf16.mxu1 %v4436_v51  ;;  %p4284_p13 = scmp.lt.s32.totalorder %s3081_s18, %s3081_s18 }
  0x68   :  { %v3605_v9 = vld [vmem:[#allocation5 + $0x2a4] ss:$16 sps:$4 sm:$0xff]   ;;  %v3608_v11 = vld [vmem:[#allocation5 + $0x2a0] ss:$16 sps:$4 sm:$0xff]  }
  0x69   :  { %1744 = vmatpush1.bf16.msra.mxu0 %v3601_v6  ;;  %v3609_v12 = vld [vmem:[#allocation5 + $0x84] ss:$16 sps:$4 sm:$0xff]   ;;  %v3613_v14 = vld [vmem:[#allocation5 + $0x80] ss:$16 sps:$4 sm:$0xff]  }
  0x6a   :  { %1785 = vmatpush1.bf16.msra.mxu1 %v3602_v7  ;;  %1745 = vmatprep.subr.bf16.mxu0 %v3603_v8  ;;  %v3611_v13 = vld [vmem:[#allocation5 + $0x284] ss:$16 sps:$4 sm:$0xff]   ;;  %v3614_v15 = vld [vmem:[#allocation5 + $0x280] ss:$16 sps:$4 sm:$0xff]   ;;  %v4442_v7 = vcombine.low %v152_v48, %v152_v48 }
  0x6b   :  { %1786 = vmatprep.subr.bf16.mxu1 %v3605_v9  ;;  %v3615_v16 = vld [vmem:[#allocation5 + $0x64] ss:$16 sps:$4 sm:$0xff]   ;;  %v3619_v18 = vld [vmem:[#allocation5 + $0x60] ss:$16 sps:$4 sm:$0xff]  }
  0x6c   :  { %v3617_v17 = vld [vmem:[#allocation5 + $0x264] ss:$16 sps:$4 sm:$0xff]   ;;  %v3620_v19 = vld [vmem:[#allocation5 + $0x260] ss:$16 sps:$4 sm:$0xff]  }
  0x6d   :  { %1746 = vmatpush1.bf16.msra.mxu0 %v3607_v10  ;;  %v3621_v20 = vld [vmem:[#allocation5 + $0x44] ss:$16 sps:$4 sm:$0xff]   ;;  %v3625_v22 = vld [vmem:[#allocation5 + $0x40] ss:$16 sps:$4 sm:$0xff]  }
  0x6e   :  { %1787 = vmatpush1.bf16.msra.mxu1 %v3608_v11  ;;  %1747 = vmatprep.subr.bf16.mxu0 %v3609_v12  ;;  %v3623_v21 = vld [vmem:[#allocation5 + $0x244] ss:$16 sps:$4 sm:$0xff]   ;;  %v3626_v23 = vld [vmem:[#allocation5 + $0x240] ss:$16 sps:$4 sm:$0xff]  }
  0x6f   :  { %1788 = vmatprep.subr.bf16.mxu1 %v3611_v13  ;;  %v3627_v24 = vld [vmem:[#allocation5 + $0x24] ss:$16 sps:$4 sm:$0xff]   ;;  %v3631_v26 = vld [vmem:[#allocation5 + $0x20] ss:$16 sps:$4 sm:$0xff]  }
  0x70   :  { %v3629_v25 = vld [vmem:[#allocation5 + $0x224] ss:$16 sps:$4 sm:$0xff]   ;;  %v3632_v27 = vld [vmem:[#allocation5 + $0x220] ss:$16 sps:$4 sm:$0xff]  }
  0x71   :  { %1748 = vmatpush1.bf16.msra.mxu0 %v3613_v14  ;;  %v3633_v28 = vld [vmem:[#allocation5 + $0x4] ss:$16 sps:$4 sm:$0xff]   ;;  %v3637_v30 = vld [vmem:[#allocation5] ss:$16 sps:$4 sm:$0xff]  }
  0x72   :  { %1789 = vmatpush1.bf16.msra.mxu1 %v3614_v15  ;;  %1749 = vmatprep.subr.bf16.mxu0 %v3615_v16  ;;  %v3635_v29 = vld [vmem:[#allocation5 + $0x204] ss:$16 sps:$4 sm:$0xff]   ;;  %v3638_v31 = vld [vmem:[#allocation5 + $0x200] ss:$16 sps:$4 sm:$0xff]  }
  0x73   :  { %1790 = vmatprep.subr.bf16.mxu1 %v3617_v17  ;;  %v3639_v32 = vld [vmem:[#allocation5 + $0x1e4] ss:$16 sps:$4 sm:$0xff]   ;;  %v3643_v34 = vld [vmem:[#allocation5 + $0x1e0] ss:$16 sps:$4 sm:$0xff]  }
  0x74   :  { %v3641_v33 = vld [vmem:[#allocation5 + $0x3e4] ss:$16 sps:$4 sm:$0xff]   ;;  %v3644_v35 = vld [vmem:[#allocation5 + $0x3e0] ss:$16 sps:$4 sm:$0xff]  }
  0x75   :  { %1750 = vmatpush1.bf16.msra.mxu0 %v3619_v18  ;;  %v3645_v36 = vld [vmem:[#allocation5 + $0x1c4] ss:$16 sps:$4 sm:$0xff]   ;;  %v3649_v38 = vld [vmem:[#allocation5 + $0x1c0] ss:$16 sps:$4 sm:$0xff]  }
  0x76   :  { %1791 = vmatpush1.bf16.msra.mxu1 %v3620_v19  ;;  %1751 = vmatprep.subr.bf16.mxu0 %v3621_v20  ;;  %v3647_v37 = vld [vmem:[#allocation5 + $0x3c4] ss:$16 sps:$4 sm:$0xff]   ;;  %v3650_v39 = vld [vmem:[#allocation5 + $0x3c0] ss:$16 sps:$4 sm:$0xff]  }
  0x77   :  { %1792 = vmatprep.subr.bf16.mxu1 %v3623_v21  ;;  %v3651_v40 = vld [vmem:[#allocation5 + $0x1a4] ss:$16 sps:$4 sm:$0xff]   ;;  %v3655_v42 = vld [vmem:[#allocation5 + $0x1a0] ss:$16 sps:$4 sm:$0xff]  }
  0x78   :  { %v3653_v41 = vld [vmem:[#allocation5 + $0x3a4] ss:$16 sps:$4 sm:$0xff]   ;;  %v3656_v43 = vld [vmem:[#allocation5 + $0x3a0] ss:$16 sps:$4 sm:$0xff]  }
  0x79   :  { %1752 = vmatpush1.bf16.msra.mxu0 %v3625_v22  ;;  %v3657_v44 = vld [vmem:[#allocation5 + $0x184] ss:$16 sps:$4 sm:$0xff]   ;;  %v3661_v49 = vld [vmem:[#allocation5 + $0x180] ss:$16 sps:$4 sm:$0xff]  }
  0x7a   :  { %1793 = vmatpush1.bf16.msra.mxu1 %v3626_v23  ;;  %1753 = vmatprep.subr.bf16.mxu0 %v3627_v24  ;;  %v3659_v45 = vld [vmem:[#allocation5 + $0x384] ss:$16 sps:$4 sm:$0xff]   ;;  %v3662_v50 = vld [vmem:[#allocation5 + $0x380] ss:$16 sps:$4 sm:$0xff]  }
  0x7b   :  { %1794 = vmatprep.subr.bf16.mxu1 %v3629_v25  ;;  %v151_v46 = vld [vmem:[#allocation2] sm:$0xff] }
  0x7c   :  { %v4434_v47 = vcombine.high %v151_v46, %v151_v46  ;;  %v3663_v52 = vld [vmem:[#allocation5 + $0x164] ss:$16 sps:$4 sm:$0xff]   ;;  %v3667_v54 = vld [vmem:[#allocation5 + $0x160] ss:$16 sps:$4 sm:$0xff]   ;;  %v4440_v6 = vcombine.low %v151_v46, %v151_v46 }
  0x7d   :  { %1754 = vmatpush1.bf16.msra.mxu0 %v3631_v26  ;;  %v3665_v53 = vld [vmem:[#allocation5 + $0x364] ss:$16 sps:$4 sm:$0xff]   ;;  %v3668_v55 = vld [vmem:[#allocation5 + $0x360] ss:$16 sps:$4 sm:$0xff]  }
  0x7e   :  { %1795 = vmatpush1.bf16.msra.mxu1 %v3632_v27  ;;  %1755 = vmatprep.subr.bf16.mxu0 %v3633_v28  ;;  %v3669_v56 = vld [vmem:[#allocation5 + $0x144] ss:$16 sps:$4 sm:$0xff]   ;;  %v3673_v58 = vld [vmem:[#allocation5 + $0x140] ss:$16 sps:$4 sm:$0xff]  }
  0x7f   :  { %1796 = vmatprep.subr.bf16.mxu1 %v3635_v29  ;;  %1773 = vmatprep.mubr.bf16.mxu0 %v4434_v47  ;;  %v3671_v57 = vld [vmem:[#allocation5 + $0x344] ss:$16 sps:$4 sm:$0xff]   ;;  %v3674_v59 = vld [vmem:[#allocation5 + $0x340] ss:$16 sps:$4 sm:$0xff]  }
  0x80   :  { %v3675_v60 = vld [vmem:[#allocation5 + $0x124] ss:$16 sps:$4 sm:$0xff]   ;;  %v3679_v62 = vld [vmem:[#allocation5 + $0x120] ss:$16 sps:$4 sm:$0xff]  }
  0x81   :  { %1756 = vmatpush1.bf16.msra.mxu0 %v3637_v30  ;;  %v3677_v61 = vld [vmem:[#allocation5 + $0x324] ss:$16 sps:$4 sm:$0xff]   ;;  %v3680_v63 = vld [vmem:[#allocation5 + $0x320] ss:$16 sps:$4 sm:$0xff]  }
  0x82   :  { %1797 = vmatpush1.bf16.msra.mxu1 %v3638_v31  ;;  %1757 = vmatprep.subr.bf16.mxu0 %v3639_v32  ;;  %v3681_v0 = vld [vmem:[#allocation5 + $0x104] ss:$16 sps:$4 sm:$0xff]   ;;  %v3685_v2 = vld [vmem:[#allocation5 + $0x100] ss:$16 sps:$4 sm:$0xff]  }
  0x83   :  { %1798 = vmatprep.subr.bf16.mxu1 %v3641_v33  ;;  %v3683_v1 = vld [vmem:[#allocation5 + $0x304] ss:$16 sps:$4 sm:$0xff]   ;;  %v3686_v3 = vld [vmem:[#allocation5 + $0x300] ss:$16 sps:$4 sm:$0xff]   ;;  %v4448_v33 = vld [vmem:[#allocation2 + $0x18] sm:$0xff] }
  0x84   :  { %v3693_v4 = vld [vmem:[#allocation5 + $0x4e4] ss:$16 sps:$4 sm:$0xff]   ;;  %v3691_v8 = vld [vmem:[#allocation5 + $0x4e0] ss:$16 sps:$4 sm:$0xff]  }
  0x85   :  { %1758 = vmatpush2.bf16.msra.mxu0 %v3643_v34  ;;  %v3696_v5 = vld [vmem:[#allocation5 + $0x6e4] ss:$16 sps:$4 sm:$0xff]   ;;  %v3694_v9 = vld [vmem:[#allocation5 + $0x6e0] ss:$16 sps:$4 sm:$0xff]  }
  0x86   :  { %1799 = vmatpush2.bf16.msra.mxu1 %v3644_v35  ;;  %1759 = vmatprep.subr.bf16.mxu0 %v3645_v36  ;;  %v3699_v10 = vld [vmem:[#allocation5 + $0x4c4] ss:$16 sps:$4 sm:$0xff]   ;;  %v3697_v12 = vld [vmem:[#allocation5 + $0x4c0] ss:$16 sps:$4 sm:$0xff]  }
  0x87   :  { %1800 = vmatprep.subr.bf16.mxu1 %v3647_v37  ;;  %v3702_v11 = vld [vmem:[#allocation5 + $0x6c4] ss:$16 sps:$4 sm:$0xff]   ;;  %v3700_v13 = vld [vmem:[#allocation5 + $0x6c0] ss:$16 sps:$4 sm:$0xff]   ;;  %v4456_v37 = vcombine.high %v4448_v33, %v4448_v33 }
  0x88   :  { %v3705_v14 = vld [vmem:[#allocation5 + $0x4a4] ss:$16 sps:$4 sm:$0xff]   ;;  %v3703_v16 = vld [vmem:[#allocation5 + $0x4a0] ss:$16 sps:$4 sm:$0xff]  }
  0x89   :  { %1760 = vmatpush2.bf16.msra.mxu0 %v3649_v38  ;;  %v3708_v15 = vld [vmem:[#allocation5 + $0x6a4] ss:$16 sps:$4 sm:$0xff]   ;;  %v3706_v17 = vld [vmem:[#allocation5 + $0x6a0] ss:$16 sps:$4 sm:$0xff]  }
  0x8a   :  { %1801 = vmatpush2.bf16.msra.mxu1 %v3650_v39  ;;  %1761 = vmatprep.subr.bf16.mxu0 %v3651_v40  ;;  %v3711_v18 = vld [vmem:[#allocation5 + $0x484] ss:$16 sps:$4 sm:$0xff]   ;;  %v3709_v20 = vld [vmem:[#allocation5 + $0x480] ss:$16 sps:$4 sm:$0xff]  }
  0x8b   :  { %1802 = vmatprep.subr.bf16.mxu1 %v3653_v41  ;;  %v3714_v19 = vld [vmem:[#allocation5 + $0x684] ss:$16 sps:$4 sm:$0xff]   ;;  %v3712_v21 = vld [vmem:[#allocation5 + $0x680] ss:$16 sps:$4 sm:$0xff]  }
  0x8c   :  { %v3717_v22 = vld [vmem:[#allocation5 + $0x464] ss:$16 sps:$4 sm:$0xff]   ;;  %v3715_v24 = vld [vmem:[#allocation5 + $0x460] ss:$16 sps:$4 sm:$0xff]  }
  0x8d   :  { %1762 = vmatpush2.bf16.msra.mxu0 %v3655_v42  ;;  %v3720_v23 = vld [vmem:[#allocation5 + $0x664] ss:$16 sps:$4 sm:$0xff]   ;;  %v3718_v25 = vld [vmem:[#allocation5 + $0x660] ss:$16 sps:$4 sm:$0xff]  }
  0x8e   :  { %1803 = vmatpush2.bf16.msra.mxu1 %v3656_v43  ;;  %1763 = vmatprep.subr.bf16.mxu0 %v3657_v44  ;;  %v3723_v26 = vld [vmem:[#allocation5 + $0x444] ss:$16 sps:$4 sm:$0xff]   ;;  %v3721_v28 = vld [vmem:[#allocation5 + $0x440] ss:$16 sps:$4 sm:$0xff]  }
  0x8f   :  { %1804 = vmatprep.subr.bf16.mxu1 %v3659_v45  ;;  %v3726_v27 = vld [vmem:[#allocation5 + $0x644] ss:$16 sps:$4 sm:$0xff]   ;;  %v3724_v29 = vld [vmem:[#allocation5 + $0x640] ss:$16 sps:$4 sm:$0xff]  }
  0x90   :  { %v3729_v30 = vld [vmem:[#allocation5 + $0x424] ss:$16 sps:$4 sm:$0xff]   ;;  %v3727_v34 = vld [vmem:[#allocation5 + $0x420] ss:$16 sps:$4 sm:$0xff]  }
  0x91   :  { %1764 = vmatpush2.bf16.msra.mxu0 %v3661_v49  ;;  %v3732_v31 = vld [vmem:[#allocation5 + $0x624] ss:$16 sps:$4 sm:$0xff]   ;;  %v3730_v35 = vld [vmem:[#allocation5 + $0x620] ss:$16 sps:$4 sm:$0xff]  }
  0x92   :  { %1805 = vmatpush2.bf16.msra.mxu1 %v3662_v50  ;;  %1765 = vmatprep.subr.bf16.mxu0 %v3663_v52  ;;  %v4446_v32 = vld [vmem:[#allocation2 + $0x10] sm:$0xff] }
  0x93   :  { %1806 = vmatprep.subr.bf16.mxu1 %v3665_v53  ;;  %v4452_v36 = vcombine.high %v4446_v32, %v4446_v32  ;;  %v3735_v38 = vld [vmem:[#allocation5 + $0x404] ss:$16 sps:$4 sm:$0xff]   ;;  %v3733_v40 = vld [vmem:[#allocation5 + $0x400] ss:$16 sps:$4 sm:$0xff]  }
  0x94   :  { %v3738_v39 = vld [vmem:[#allocation5 + $0x604] ss:$16 sps:$4 sm:$0xff]   ;;  %v3736_v41 = vld [vmem:[#allocation5 + $0x600] ss:$16 sps:$4 sm:$0xff]  }
  0x95   :  { %1766 = vmatpush2.bf16.msra.mxu0 %v3667_v54  ;;  %v3741_v42 = vld [vmem:[#allocation5 + $0x5e4] ss:$16 sps:$4 sm:$0xff]   ;;  %v3739_v44 = vld [vmem:[#allocation5 + $0x5e0] ss:$16 sps:$4 sm:$0xff]  }
  0x96   :  { %1807 = vmatpush2.bf16.msra.mxu1 %v3668_v55  ;;  %1767 = vmatprep.subr.bf16.mxu0 %v3669_v56  ;;  %v3744_v43 = vld [vmem:[#allocation5 + $0x7e4] ss:$16 sps:$4 sm:$0xff]   ;;  %v3742_v45 = vld [vmem:[#allocation5 + $0x7e0] ss:$16 sps:$4 sm:$0xff]  }
  0x97   :  { %1808 = vmatprep.subr.bf16.mxu1 %v3671_v57  ;;  %v3747_v46 = vld [vmem:[#allocation5 + $0x5c4] ss:$16 sps:$4 sm:$0xff]   ;;  %v3745_v49 = vld [vmem:[#allocation5 + $0x5c0] ss:$16 sps:$4 sm:$0xff]  }
  0x98   :  { %v3750_v48 = vld [vmem:[#allocation5 + $0x7c4] ss:$16 sps:$4 sm:$0xff]   ;;  %v3748_v50 = vld [vmem:[#allocation5 + $0x7c0] ss:$16 sps:$4 sm:$0xff]  }
  0x99   :  { %1768 = vmatpush2.bf16.msra.mxu0 %v3673_v58  ;;  %v3753_v52 = vld [vmem:[#allocation5 + $0x5a4] ss:$16 sps:$4 sm:$0xff]   ;;  %v3751_v54 = vld [vmem:[#allocation5 + $0x5a0] ss:$16 sps:$4 sm:$0xff]  }
  0x9a   :  { %1809 = vmatpush2.bf16.msra.mxu1 %v3674_v59  ;;  %1769 = vmatprep.subr.bf16.mxu0 %v3675_v60  ;;  %v3756_v53 = vld [vmem:[#allocation5 + $0x7a4] ss:$16 sps:$4 sm:$0xff]   ;;  %v3754_v55 = vld [vmem:[#allocation5 + $0x7a0] ss:$16 sps:$4 sm:$0xff]  }
  0x9b   :  { %1810 = vmatprep.subr.bf16.mxu1 %v3677_v61  ;;  %v3759_v56 = vld [vmem:[#allocation5 + $0x584] ss:$16 sps:$4 sm:$0xff]   ;;  %v3757_v58 = vld [vmem:[#allocation5 + $0x580] ss:$16 sps:$4 sm:$0xff]  }
  0x9c   :  { %v3762_v57 = vld [vmem:[#allocation5 + $0x784] ss:$16 sps:$4 sm:$0xff]   ;;  %v3760_v59 = vld [vmem:[#allocation5 + $0x780] ss:$16 sps:$4 sm:$0xff]  }
  0x9d   :  { %1770 = vmatpush2.bf16.msra.mxu0 %v3679_v62  ;;  %v3765_v60 = vld [vmem:[#allocation5 + $0x564] ss:$16 sps:$4 sm:$0xff]   ;;  %v3763_v62 = vld [vmem:[#allocation5 + $0x560] ss:$16 sps:$4 sm:$0xff]  }
  0x9e   :  { %1811 = vmatpush2.bf16.msra.mxu1 %v3680_v63  ;;  %1771 = vmatprep.subr.bf16.mxu0 %v3681_v0  ;;  %v3768_v61 = vld [vmem:[#allocation5 + $0x764] ss:$16 sps:$4 sm:$0xff]   ;;  %v3766_v63 = vld [vmem:[#allocation5 + $0x760] ss:$16 sps:$4 sm:$0xff]  }
  0x9f   :  { %1812 = vmatprep.subr.bf16.mxu1 %v3683_v1  ;;  %v3771_v0 = vld [vmem:[#allocation5 + $0x544] ss:$16 sps:$4 sm:$0xff]  }
  0xa0   :  { %v3774_v1 = vld [vmem:[#allocation5 + $0x744] ss:$16 sps:$4 sm:$0xff]  }
  0xa1   :  { %1772 = vmatpush2.bf16.msra.mxu0 %v3685_v2  ;;  %v3769_v2 = vld [vmem:[#allocation5 + $0x540] ss:$16 sps:$4 sm:$0xff]  }
  0xa2   :  { %1813 = vmatpush2.bf16.msra.mxu1 %v3686_v3  ;;  %1823 = vmatprep.subr.bf16.mxu0 %v3693_v4  ;;  %v3772_v3 = vld [vmem:[#allocation5 + $0x740] ss:$16 sps:$4 sm:$0xff]   ;;  %v3777_v4 = vld [vmem:[#allocation5 + $0x524] ss:$16 sps:$4 sm:$0xff]  }
  0xa3   :  { %1864 = vmatprep.subr.bf16.mxu1 %v3696_v5  ;;  %v3780_v5 = vld [vmem:[#allocation5 + $0x724] ss:$16 sps:$4 sm:$0xff]  }
  0xa4   :  { %1774 = vmatmul.mubr.bf16.vlgmr.msra.gmra.mxu0 %v4440_v6 }
  0xa5   :  { %1815 = vmatmul.mubr.bf16.vlgmr.msra.gmra.mxu1 %v4442_v7  ;;  %1824 = vmatpush1.bf16.msra.mxu0 %v3691_v8  ;;  %v3775_v8 = vld [vmem:[#allocation5 + $0x520] ss:$16 sps:$4 sm:$0xff]  }
  0xa6   :  { %1865 = vmatpush1.bf16.msra.mxu1 %v3694_v9  ;;  %1825 = vmatprep.subr.bf16.mxu0 %v3699_v10  ;;  %v3778_v9 = vld [vmem:[#allocation5 + $0x720] ss:$16 sps:$4 sm:$0xff]   ;;  %v3783_v10 = vld [vmem:[#allocation5 + $0x504] ss:$16 sps:$4 sm:$0xff]  }
  0xa7   :  { %1866 = vmatprep.subr.bf16.mxu1 %v3702_v11  ;;  %1855 = vmatprep.mubr.bf16.mxu0 %v4452_v36  ;;  %v3786_v11 = vld [vmem:[#allocation5 + $0x704] ss:$16 sps:$4 sm:$0xff]  }
  0xa8   :  { %1896 = vmatprep.mubr.bf16.mxu1 %v4456_v37 }
  0xa9   :  { %1826 = vmatpush1.bf16.msra.mxu0 %v3697_v12  ;;  %v3781_v12 = vld [vmem:[#allocation5 + $0x500] ss:$16 sps:$4 sm:$0xff]  }
  0xaa   :  { %1867 = vmatpush1.bf16.msra.mxu1 %v3700_v13  ;;  %1827 = vmatprep.subr.bf16.mxu0 %v3705_v14  ;;  %v3784_v13 = vld [vmem:[#allocation5 + $0x700] ss:$16 sps:$4 sm:$0xff]   ;;  %v3793_v14 = vld [vmem:[#allocation5 + $0xec] ss:$16 sps:$4 sm:$0xff]  }
  0xab   :  { %1868 = vmatprep.subr.bf16.mxu1 %v3708_v15  ;;  %v3796_v15 = vld [vmem:[#allocation5 + $0x2ec] ss:$16 sps:$4 sm:$0xff]  }
  0xad   :  { %1828 = vmatpush1.bf16.msra.mxu0 %v3703_v16  ;;  %v4462_v16 = vcombine.low %v4446_v32, %v4446_v32  ;;  %v3817_v32 = vld [vmem:[#allocation5 + $0x6c] ss:$16 sps:$4 sm:$0xff]  }
  0xae   :  { %1869 = vmatpush1.bf16.msra.mxu1 %v3706_v17  ;;  %1829 = vmatprep.subr.bf16.mxu0 %v3711_v18  ;;  %v4466_v17 = vcombine.low %v4448_v33, %v4448_v33  ;;  %v3791_v18 = vld [vmem:[#allocation5 + $0xe8] ss:$16 sps:$4 sm:$0xff]   ;;  %v3820_v33 = vld [vmem:[#allocation5 + $0x26c] ss:$16 sps:$4 sm:$0xff]  }
  0xaf   :  { %1870 = vmatprep.subr.bf16.mxu1 %v3714_v19  ;;  %v3794_v19 = vld [vmem:[#allocation5 + $0x2e8] ss:$16 sps:$4 sm:$0xff]  }
  0xb1   :  { %1830 = vmatpush1.bf16.msra.mxu0 %v3709_v20  ;;  %v3799_v20 = vld [vmem:[#allocation5 + $0xcc] ss:$16 sps:$4 sm:$0xff]  }
  0xb2   :  { %1871 = vmatpush1.bf16.msra.mxu1 %v3712_v21  ;;  %1831 = vmatprep.subr.bf16.mxu0 %v3717_v22  ;;  %v3802_v21 = vld [vmem:[#allocation5 + $0x2cc] ss:$16 sps:$4 sm:$0xff]   ;;  %v3797_v22 = vld [vmem:[#allocation5 + $0xc8] ss:$16 sps:$4 sm:$0xff]  }
  0xb3   :  { %1872 = vmatprep.subr.bf16.mxu1 %v3720_v23  ;;  %v3800_v23 = vld [vmem:[#allocation5 + $0x2c8] ss:$16 sps:$4 sm:$0xff]  }
  0xb5   :  { %1832 = vmatpush1.bf16.msra.mxu0 %v3715_v24  ;;  %v3805_v24 = vld [vmem:[#allocation5 + $0xac] ss:$16 sps:$4 sm:$0xff]  }
  0xb6   :  { %1873 = vmatpush1.bf16.msra.mxu1 %v3718_v25  ;;  %1833 = vmatprep.subr.bf16.mxu0 %v3723_v26  ;;  %v3808_v25 = vld [vmem:[#allocation5 + $0x2ac] ss:$16 sps:$4 sm:$0xff]   ;;  %v3803_v26 = vld [vmem:[#allocation5 + $0xa8] ss:$16 sps:$4 sm:$0xff]  }
  0xb7   :  { %1874 = vmatprep.subr.bf16.mxu1 %v3726_v27  ;;  %v3806_v27 = vld [vmem:[#allocation5 + $0x2a8] ss:$16 sps:$4 sm:$0xff]  }
  0xb9   :  { %1834 = vmatpush1.bf16.msra.mxu0 %v3721_v28  ;;  %v3811_v28 = vld [vmem:[#allocation5 + $0x8c] ss:$16 sps:$4 sm:$0xff]  }
  0xba   :  { %1875 = vmatpush1.bf16.msra.mxu1 %v3724_v29  ;;  %1835 = vmatprep.subr.bf16.mxu0 %v3729_v30  ;;  %v3814_v29 = vld [vmem:[#allocation5 + $0x28c] ss:$16 sps:$4 sm:$0xff]   ;;  %v3809_v30 = vld [vmem:[#allocation5 + $0x88] ss:$16 sps:$4 sm:$0xff]  }
  0xbb   :  { %1876 = vmatprep.subr.bf16.mxu1 %v3732_v31  ;;  %v3812_v31 = vld [vmem:[#allocation5 + $0x288] ss:$16 sps:$4 sm:$0xff]  }
  0xbd   :  { %1836 = vmatpush1.bf16.msra.mxu0 %v3727_v34  ;;  %v3815_v34 = vld [vmem:[#allocation5 + $0x68] ss:$16 sps:$4 sm:$0xff]  }
  0xbe   :  { %1877 = vmatpush1.bf16.msra.mxu1 %v3730_v35  ;;  %1837 = vmatprep.subr.bf16.mxu0 %v3735_v38  ;;  %v3826_v35 = vld [vmem:[#allocation5 + $0x24c] ss:$16 sps:$4 sm:$0xff]   ;;  %v3821_v38 = vld [vmem:[#allocation5 + $0x48] ss:$16 sps:$4 sm:$0xff]  }
  0xbf   :  { %1878 = vmatprep.subr.bf16.mxu1 %v3738_v39  ;;  %v3824_v39 = vld [vmem:[#allocation5 + $0x248] ss:$16 sps:$4 sm:$0xff]  }
  0xc1   :  { %1838 = vmatpush1.bf16.msra.mxu0 %v3733_v40  ;;  %v3829_v40 = vld [vmem:[#allocation5 + $0x2c] ss:$16 sps:$4 sm:$0xff]  }
  0xc2   :  { %1879 = vmatpush1.bf16.msra.mxu1 %v3736_v41  ;;  %1839 = vmatprep.subr.bf16.mxu0 %v3741_v42  ;;  %v3832_v41 = vld [vmem:[#allocation5 + $0x22c] ss:$16 sps:$4 sm:$0xff]   ;;  %v3827_v42 = vld [vmem:[#allocation5 + $0x28] ss:$16 sps:$4 sm:$0xff]  }
  0xc3   :  { %1880 = vmatprep.subr.bf16.mxu1 %v3744_v43  ;;  %v3830_v43 = vld [vmem:[#allocation5 + $0x228] ss:$16 sps:$4 sm:$0xff]  }
  0xc5   :  { %1840 = vmatpush2.bf16.msra.mxu0 %v3739_v44  ;;  %v3835_v44 = vld [vmem:[#allocation5 + $0xc] ss:$16 sps:$4 sm:$0xff]  }
  0xc6   :  { %1881 = vmatpush2.bf16.msra.mxu1 %v3742_v45  ;;  %1841 = vmatprep.subr.bf16.mxu0 %v3747_v46  ;;  %v3838_v45 = vld [vmem:[#allocation5 + $0x20c] ss:$16 sps:$4 sm:$0xff]   ;;  %v3833_v46 = vld [vmem:[#allocation5 + $0x8] ss:$16 sps:$4 sm:$0xff]  }
  0xc7   :  { %1882 = vmatprep.subr.bf16.mxu1 %v3750_v48  ;;  %v3836_v48 = vld [vmem:[#allocation5 + $0x208] ss:$16 sps:$4 sm:$0xff]  }
  0xc9   :  { %1842 = vmatpush2.bf16.msra.mxu0 %v3745_v49  ;;  %v3841_v49 = vld [vmem:[#allocation5 + $0x1ec] ss:$16 sps:$4 sm:$0xff]  }
  0xca   :  { %1883 = vmatpush2.bf16.msra.mxu1 %v3748_v50  ;;  %1843 = vmatprep.subr.bf16.mxu0 %v3753_v52  ;;  %v3844_v50 = vld [vmem:[#allocation5 + $0x3ec] ss:$16 sps:$4 sm:$0xff]   ;;  %v3839_v52 = vld [vmem:[#allocation5 + $0x1e8] ss:$16 sps:$4 sm:$0xff]  }
  0xcb   :  { %1884 = vmatprep.subr.bf16.mxu1 %v3756_v53  ;;  %v3842_v53 = vld [vmem:[#allocation5 + $0x3e8] ss:$16 sps:$4 sm:$0xff]  }
  0xcd   :  { %1844 = vmatpush2.bf16.msra.mxu0 %v3751_v54  ;;  %v3847_v54 = vld [vmem:[#allocation5 + $0x1cc] ss:$16 sps:$4 sm:$0xff]  }
  0xce   :  { %1885 = vmatpush2.bf16.msra.mxu1 %v3754_v55  ;;  %1845 = vmatprep.subr.bf16.mxu0 %v3759_v56  ;;  %v3850_v55 = vld [vmem:[#allocation5 + $0x3cc] ss:$16 sps:$4 sm:$0xff]   ;;  %v3845_v56 = vld [vmem:[#allocation5 + $0x1c8] ss:$16 sps:$4 sm:$0xff]  }
  0xcf   :  { %1886 = vmatprep.subr.bf16.mxu1 %v3762_v57  ;;  %v3848_v57 = vld [vmem:[#allocation5 + $0x3c8] ss:$16 sps:$4 sm:$0xff]  }
  0xd1   :  { %1846 = vmatpush2.bf16.msra.mxu0 %v3757_v58  ;;  %v3853_v58 = vld [vmem:[#allocation5 + $0x1ac] ss:$16 sps:$4 sm:$0xff]  }
  0xd2   :  { %1887 = vmatpush2.bf16.msra.mxu1 %v3760_v59  ;;  %1847 = vmatprep.subr.bf16.mxu0 %v3765_v60  ;;  %v3856_v59 = vld [vmem:[#allocation5 + $0x3ac] ss:$16 sps:$4 sm:$0xff]   ;;  %v3851_v60 = vld [vmem:[#allocation5 + $0x1a8] ss:$16 sps:$4 sm:$0xff]  }
  0xd3   :  { %1888 = vmatprep.subr.bf16.mxu1 %v3768_v61  ;;  %v3854_v61 = vld [vmem:[#allocation5 + $0x3a8] ss:$16 sps:$4 sm:$0xff]  }
  0xd5   :  { %1848 = vmatpush2.bf16.msra.mxu0 %v3763_v62  ;;  %v3859_v62 = vld [vmem:[#allocation5 + $0x18c] ss:$16 sps:$4 sm:$0xff]  }
  0xd6   :  { %1889 = vmatpush2.bf16.msra.mxu1 %v3766_v63  ;;  %1849 = vmatprep.subr.bf16.mxu0 %v3771_v0  ;;  %v3862_v63 = vld [vmem:[#allocation5 + $0x38c] ss:$16 sps:$4 sm:$0xff]   ;;  %v3857_v0 = vld [vmem:[#allocation5 + $0x188] ss:$16 sps:$4 sm:$0xff]  }
  0xd7   :  { %1890 = vmatprep.subr.bf16.mxu1 %v3774_v1  ;;  %v3860_v1 = vld [vmem:[#allocation5 + $0x388] ss:$16 sps:$4 sm:$0xff]  }
  0xd9   :  { %1850 = vmatpush2.bf16.msra.mxu0 %v3769_v2  ;;  %v3865_v2 = vld [vmem:[#allocation5 + $0x16c] ss:$16 sps:$4 sm:$0xff]  }
  0xda   :  { %1891 = vmatpush2.bf16.msra.mxu1 %v3772_v3  ;;  %1851 = vmatprep.subr.bf16.mxu0 %v3777_v4  ;;  %v3868_v3 = vld [vmem:[#allocation5 + $0x36c] ss:$16 sps:$4 sm:$0xff]   ;;  %v3863_v4 = vld [vmem:[#allocation5 + $0x168] ss:$16 sps:$4 sm:$0xff]  }
  0xdb   :  { %1892 = vmatprep.subr.bf16.mxu1 %v3780_v5  ;;  %v3866_v5 = vld [vmem:[#allocation5 + $0x368] ss:$16 sps:$4 sm:$0xff]  }
  0xdd   :  { %1852 = vmatpush2.bf16.msra.mxu0 %v3775_v8  ;;  %v3871_v8 = vld [vmem:[#allocation5 + $0x14c] ss:$16 sps:$4 sm:$0xff]  }
  0xde   :  { %1893 = vmatpush2.bf16.msra.mxu1 %v3778_v9  ;;  %1853 = vmatprep.subr.bf16.mxu0 %v3783_v10  ;;  %v3874_v9 = vld [vmem:[#allocation5 + $0x34c] ss:$16 sps:$4 sm:$0xff]   ;;  %v3869_v10 = vld [vmem:[#allocation5 + $0x148] ss:$16 sps:$4 sm:$0xff]  }
  0xdf   :  { %1894 = vmatprep.subr.bf16.mxu1 %v3786_v11  ;;  %v3872_v11 = vld [vmem:[#allocation5 + $0x348] ss:$16 sps:$4 sm:$0xff]  }
  0xe1   :  { %1854 = vmatpush2.bf16.msra.mxu0 %v3781_v12  ;;  %v3877_v12 = vld [vmem:[#allocation5 + $0x12c] ss:$16 sps:$4 sm:$0xff]  }
  0xe2   :  { %1895 = vmatpush2.bf16.msra.mxu1 %v3784_v13  ;;  %1905 = vmatprep.subr.bf16.mxu0 %v3793_v14  ;;  %v3880_v13 = vld [vmem:[#allocation5 + $0x32c] ss:$16 sps:$4 sm:$0xff]   ;;  %v3875_v14 = vld [vmem:[#allocation5 + $0x128] ss:$16 sps:$4 sm:$0xff]  }
  0xe3   :  { %1946 = vmatprep.subr.bf16.mxu1 %v3796_v15  ;;  %v3878_v15 = vld [vmem:[#allocation5 + $0x328] ss:$16 sps:$4 sm:$0xff]  }
  0xe4   :  { %1856 = vmatmul.mubr.bf16.vlgmr.msra.gmra.mxu0 %v4462_v16 }
  0xe5   :  { %1897 = vmatmul.mubr.bf16.vlgmr.msra.gmra.mxu1 %v4466_v17  ;;  %1906 = vmatpush1.bf16.msra.mxu0 %v3791_v18  ;;  %v3883_v18 = vld [vmem:[#allocation5 + $0x10c] ss:$16 sps:$4 sm:$0xff]  }
  0xe6   :  { %1947 = vmatpush1.bf16.msra.mxu1 %v3794_v19  ;;  %1907 = vmatprep.subr.bf16.mxu0 %v3799_v20  ;;  %v3886_v19 = vld [vmem:[#allocation5 + $0x30c] ss:$16 sps:$4 sm:$0xff]   ;;  %v3881_v20 = vld [vmem:[#allocation5 + $0x108] ss:$16 sps:$4 sm:$0xff]  }
  0xe7   :  { %1948 = vmatprep.subr.bf16.mxu1 %v3802_v21  ;;  %1937 = vmatprep.mubr.bf16.mxu0 %v4434_v47  ;;  %v3818_v47 = vld [vmem:[#allocation5 + $0x268] ss:$16 sps:$4 sm:$0xff]  }
  0xe8   :  { %1978 = vmatprep.mubr.bf16.mxu1 %v4436_v51  ;;  %v3823_v51 = vld [vmem:[#allocation5 + $0x4c] ss:$16 sps:$4 sm:$0xff]   ;;  %v3884_v21 = vld [vmem:[#allocation5 + $0x308] ss:$16 sps:$4 sm:$0xff]  }
  0xe9   :  { %1908 = vmatpush1.bf16.msra.mxu0 %v3797_v22  ;;  %v3889_v22 = vld [vmem:[#allocation5 + $0x4ec] ss:$16 sps:$4 sm:$0xff]  }
  0xea   :  { %1949 = vmatpush1.bf16.msra.mxu1 %v3800_v23  ;;  %1909 = vmatprep.subr.bf16.mxu0 %v3805_v24  ;;  %v3892_v23 = vld [vmem:[#allocation5 + $0x6ec] ss:$16 sps:$4 sm:$0xff]   ;;  %v3887_v24 = vld [vmem:[#allocation5 + $0x4e8] ss:$16 sps:$4 sm:$0xff]  }
  0xeb   :  { %1950 = vmatprep.subr.bf16.mxu1 %v3808_v25  ;;  %v3890_v25 = vld [vmem:[#allocation5 + $0x6e8] ss:$16 sps:$4 sm:$0xff]  }
  0xed   :  { %1910 = vmatpush1.bf16.msra.mxu0 %v3803_v26  ;;  %v3895_v26 = vld [vmem:[#allocation5 + $0x4cc] ss:$16 sps:$4 sm:$0xff]  }
  0xee   :  { %1951 = vmatpush1.bf16.msra.mxu1 %v3806_v27  ;;  %1911 = vmatprep.subr.bf16.mxu0 %v3811_v28  ;;  %v3898_v27 = vld [vmem:[#allocation5 + $0x6cc] ss:$16 sps:$4 sm:$0xff]   ;;  %v3893_v28 = vld [vmem:[#allocation5 + $0x4c8] ss:$16 sps:$4 sm:$0xff]  }
  0xef   :  { %1952 = vmatprep.subr.bf16.mxu1 %v3814_v29  ;;  %v3896_v29 = vld [vmem:[#allocation5 + $0x6c8] ss:$16 sps:$4 sm:$0xff]  }
  0xf1   :  { %1912 = vmatpush1.bf16.msra.mxu0 %v3809_v30  ;;  %v3901_v30 = vld [vmem:[#allocation5 + $0x4ac] ss:$16 sps:$4 sm:$0xff]  }
  0xf2   :  { %1953 = vmatpush1.bf16.msra.mxu1 %v3812_v31  ;;  %1913 = vmatprep.subr.bf16.mxu0 %v3817_v32  ;;  %v3904_v31 = vld [vmem:[#allocation5 + $0x6ac] ss:$16 sps:$4 sm:$0xff]   ;;  %v3899_v32 = vld [vmem:[#allocation5 + $0x4a8] ss:$16 sps:$4 sm:$0xff]  }
  0xf3   :  { %1954 = vmatprep.subr.bf16.mxu1 %v3820_v33  ;;  %v3902_v33 = vld [vmem:[#allocation5 + $0x6a8] ss:$16 sps:$4 sm:$0xff]  }
  0xf5   :  { %1914 = vmatpush1.bf16.msra.mxu0 %v3815_v34  ;;  %v3907_v34 = vld [vmem:[#allocation5 + $0x48c] ss:$16 sps:$4 sm:$0xff]  }
  0xf6   :  { %1955 = vmatpush1.bf16.msra.mxu1 %v3818_v47  ;;  %1915 = vmatprep.subr.bf16.mxu0 %v3823_v51  ;;  %v3905_v47 = vld [vmem:[#allocation5 + $0x488] ss:$16 sps:$4 sm:$0xff]   ;;  %v3913_v51 = vld [vmem:[#allocation5 + $0x46c] ss:$16 sps:$4 sm:$0xff]  }
  0xf7   :  { %1956 = vmatprep.subr.bf16.mxu1 %v3826_v35  ;;  %v3916_v35 = vld [vmem:[#allocation5 + $0x66c] ss:$16 sps:$4 sm:$0xff]  }
  0xf9   :  { %1916 = vmatpush1.bf16.msra.mxu0 %v3821_v38  ;;  %v3911_v38 = vld [vmem:[#allocation5 + $0x468] ss:$16 sps:$4 sm:$0xff]  }
  0xfa   :  { %1957 = vmatpush1.bf16.msra.mxu1 %v3824_v39  ;;  %1917 = vmatprep.subr.bf16.mxu0 %v3829_v40  ;;  %v3914_v39 = vld [vmem:[#allocation5 + $0x668] ss:$16 sps:$4 sm:$0xff]   ;;  %v3919_v40 = vld [vmem:[#allocation5 + $0x44c] ss:$16 sps:$4 sm:$0xff]  }
  0xfb   :  { %1958 = vmatprep.subr.bf16.mxu1 %v3832_v41  ;;  %v3920_v41 = vld [vmem:[#allocation5 + $0x648] ss:$16 sps:$4 sm:$0xff]  }
  0xfd   :  { %1918 = vmatpush1.bf16.msra.mxu0 %v3827_v42  ;;  %v3925_v42 = vld [vmem:[#allocation5 + $0x42c] ss:$16 sps:$4 sm:$0xff]  }
  0xfe   :  { %1959 = vmatpush1.bf16.msra.mxu1 %v3830_v43  ;;  %1919 = vmatprep.subr.bf16.mxu0 %v3835_v44  ;;  %v3928_v43 = vld [vmem:[#allocation5 + $0x62c] ss:$16 sps:$4 sm:$0xff]   ;;  %v3923_v44 = vld [vmem:[#allocation5 + $0x428] ss:$16 sps:$4 sm:$0xff]  }
  0xff   :  { %1960 = vmatprep.subr.bf16.mxu1 %v3838_v45  ;;  %v3926_v45 = vld [vmem:[#allocation5 + $0x628] ss:$16 sps:$4 sm:$0xff]  }
 0x101   :  { %1920 = vmatpush1.bf16.msra.mxu0 %v3833_v46  ;;  %v3931_v46 = vld [vmem:[#allocation5 + $0x40c] ss:$16 sps:$4 sm:$0xff]  }
 0x102   :  { %1961 = vmatpush1.bf16.msra.mxu1 %v3836_v48  ;;  %1921 = vmatprep.subr.bf16.mxu0 %v3841_v49  ;;  %v3934_v48 = vld [vmem:[#allocation5 + $0x60c] ss:$16 sps:$4 sm:$0xff]   ;;  %v3929_v49 = vld [vmem:[#allocation5 + $0x408] ss:$16 sps:$4 sm:$0xff]  }
 0x103   :  { %1962 = vmatprep.subr.bf16.mxu1 %v3844_v50  ;;  %v3932_v50 = vld [vmem:[#allocation5 + $0x608] ss:$16 sps:$4 sm:$0xff]  }
 0x105   :  { %1922 = vmatpush2.bf16.msra.mxu0 %v3839_v52  ;;  %v3937_v52 = vld [vmem:[#allocation5 + $0x5ec] ss:$16 sps:$4 sm:$0xff]  }
 0x106   :  { %1963 = vmatpush2.bf16.msra.mxu1 %v3842_v53  ;;  %1923 = vmatprep.subr.bf16.mxu0 %v3847_v54  ;;  %v3940_v53 = vld [vmem:[#allocation5 + $0x7ec] ss:$16 sps:$4 sm:$0xff]   ;;  %v3935_v54 = vld [vmem:[#allocation5 + $0x5e8] ss:$16 sps:$4 sm:$0xff]  }
 0x107   :  { %1964 = vmatprep.subr.bf16.mxu1 %v3850_v55  ;;  %v3938_v55 = vld [vmem:[#allocation5 + $0x7e8] ss:$16 sps:$4 sm:$0xff]  }
 0x109   :  { %1924 = vmatpush2.bf16.msra.mxu0 %v3845_v56  ;;  %v3943_v56 = vld [vmem:[#allocation5 + $0x5cc] ss:$16 sps:$4 sm:$0xff]  }
 0x10a   :  { %1965 = vmatpush2.bf16.msra.mxu1 %v3848_v57  ;;  %1925 = vmatprep.subr.bf16.mxu0 %v3853_v58  ;;  %v3946_v57 = vld [vmem:[#allocation5 + $0x7cc] ss:$16 sps:$4 sm:$0xff]   ;;  %v3941_v58 = vld [vmem:[#allocation5 + $0x5c8] ss:$16 sps:$4 sm:$0xff]  }
 0x10b   :  { %1966 = vmatprep.subr.bf16.mxu1 %v3856_v59  ;;  %v3944_v59 = vld [vmem:[#allocation5 + $0x7c8] ss:$16 sps:$4 sm:$0xff]  }
 0x10d   :  { %1926 = vmatpush2.bf16.msra.mxu0 %v3851_v60  ;;  %v3949_v60 = vld [vmem:[#allocation5 + $0x5ac] ss:$16 sps:$4 sm:$0xff]  }
 0x10e   :  { %1967 = vmatpush2.bf16.msra.mxu1 %v3854_v61  ;;  %1927 = vmatprep.subr.bf16.mxu0 %v3859_v62  ;;  %v3952_v61 = vld [vmem:[#allocation5 + $0x7ac] ss:$16 sps:$4 sm:$0xff]   ;;  %v3947_v62 = vld [vmem:[#allocation5 + $0x5a8] ss:$16 sps:$4 sm:$0xff]  }
 0x10f   :  { %1968 = vmatprep.subr.bf16.mxu1 %v3862_v63  ;;  %v3950_v63 = vld [vmem:[#allocation5 + $0x7a8] ss:$16 sps:$4 sm:$0xff]  }
 0x111   :  { %1928 = vmatpush2.bf16.msra.mxu0 %v3857_v0  ;;  %v3955_v0 = vld [vmem:[#allocation5 + $0x58c] ss:$16 sps:$4 sm:$0xff]  }
 0x112   :  { %1969 = vmatpush2.bf16.msra.mxu1 %v3860_v1  ;;  %1929 = vmatprep.subr.bf16.mxu0 %v3865_v2  ;;  %v3958_v1 = vld [vmem:[#allocation5 + $0x78c] ss:$16 sps:$4 sm:$0xff]   ;;  %v3953_v2 = vld [vmem:[#allocation5 + $0x588] ss:$16 sps:$4 sm:$0xff]  }
 0x113   :  { %1970 = vmatprep.subr.bf16.mxu1 %v3868_v3  ;;  %v3956_v3 = vld [vmem:[#allocation5 + $0x788] ss:$16 sps:$4 sm:$0xff]  }
 0x115   :  { %1930 = vmatpush2.bf16.msra.mxu0 %v3863_v4  ;;  %v3961_v4 = vld [vmem:[#allocation5 + $0x56c] ss:$16 sps:$4 sm:$0xff]  }
 0x116   :  { %1971 = vmatpush2.bf16.msra.mxu1 %v3866_v5  ;;  %1931 = vmatprep.subr.bf16.mxu0 %v3871_v8  ;;  %v3964_v5 = vld [vmem:[#allocation5 + $0x76c] ss:$16 sps:$4 sm:$0xff]   ;;  %v3959_v8 = vld [vmem:[#allocation5 + $0x568] ss:$16 sps:$4 sm:$0xff]  }
 0x117   :  { %1972 = vmatprep.subr.bf16.mxu1 %v3874_v9  ;;  %v3962_v9 = vld [vmem:[#allocation5 + $0x768] ss:$16 sps:$4 sm:$0xff]  }
 0x119   :  { %1932 = vmatpush2.bf16.msra.mxu0 %v3869_v10  ;;  %v3967_v10 = vld [vmem:[#allocation5 + $0x54c] ss:$16 sps:$4 sm:$0xff]  }
 0x11a   :  { %1973 = vmatpush2.bf16.msra.mxu1 %v3872_v11  ;;  %1933 = vmatprep.subr.bf16.mxu0 %v3877_v12  ;;  %v3970_v11 = vld [vmem:[#allocation5 + $0x74c] ss:$16 sps:$4 sm:$0xff]   ;;  %v3965_v12 = vld [vmem:[#allocation5 + $0x548] ss:$16 sps:$4 sm:$0xff]  }
 0x11b   :  { %1974 = vmatprep.subr.bf16.mxu1 %v3880_v13  ;;  %v3968_v13 = vld [vmem:[#allocation5 + $0x748] ss:$16 sps:$4 sm:$0xff]  }
 0x11d   :  { %1934 = vmatpush2.bf16.msra.mxu0 %v3875_v14  ;;  %v3973_v14 = vld [vmem:[#allocation5 + $0x52c] ss:$16 sps:$4 sm:$0xff]  }
 0x11e   :  { %1975 = vmatpush2.bf16.msra.mxu1 %v3878_v15  ;;  %1935 = vmatprep.subr.bf16.mxu0 %v3883_v18  ;;  %v3976_v15 = vld [vmem:[#allocation5 + $0x72c] ss:$16 sps:$4 sm:$0xff]   ;;  %v3971_v18 = vld [vmem:[#allocation5 + $0x528] ss:$16 sps:$4 sm:$0xff]  }
 0x11f   :  { %1976 = vmatprep.subr.bf16.mxu1 %v3886_v19  ;;  %v3974_v19 = vld [vmem:[#allocation5 + $0x728] ss:$16 sps:$4 sm:$0xff]  }
 0x121   :  { %1936 = vmatpush2.bf16.msra.mxu0 %v3881_v20  ;;  %v3979_v20 = vld [vmem:[#allocation5 + $0x50c] ss:$16 sps:$4 sm:$0xff]  }
 0x122   :  { %1977 = vmatpush2.bf16.msra.mxu1 %v3884_v21  ;;  %1987 = vmatprep.subr.bf16.mxu0 %v3889_v22  ;;  %v3982_v21 = vld [vmem:[#allocation5 + $0x70c] ss:$16 sps:$4 sm:$0xff]   ;;  %v3977_v22 = vld [vmem:[#allocation5 + $0x508] ss:$16 sps:$4 sm:$0xff]  }
 0x123   :  { %2028 = vmatprep.subr.bf16.mxu1 %v3892_v23  ;;  %v3980_v23 = vld [vmem:[#allocation5 + $0x708] ss:$16 sps:$4 sm:$0xff]  }
 0x124   :  { %1938 = vmatmul.mubr.bf16.vlgmr.msra.gmra.mxu0 %v4440_v6  ;;  %v3910_v6 = vld [vmem:[#allocation5 + $0x68c] ss:$16 sps:$4 sm:$0xff]  }
 0x125   :  { %1979 = vmatmul.mubr.bf16.vlgmr.msra.gmra.mxu1 %v4442_v7  ;;  %1988 = vmatpush1.bf16.msra.mxu0 %v3887_v24  ;;  %v3908_v7 = vld [vmem:[#allocation5 + $0x688] ss:$16 sps:$4 sm:$0xff]  }
 0x126   :  { %2029 = vmatpush1.bf16.msra.mxu1 %v3890_v25  ;;  %1989 = vmatprep.subr.bf16.mxu0 %v3895_v26  ;;  %v3985_v24 = vld [vmem:[#allocation8 + $0x74] ss:$8 sps:$4 sm:$0xff]   ;;  %v3983_v25 = vld [vmem:[#allocation8 + $0x70] ss:$8 sps:$4 sm:$0xff]   ;;  %v3988_v26 = vld [vmem:[#allocation8 + $0x64] ss:$8 sps:$4 sm:$0xff]  }
 0x127   :  { %2030 = vmatprep.subr.bf16.mxu1 %v3898_v27  ;;  %2019 = vmatprep.mubr.bf16.mxu0 %v4452_v36  ;;  %v3922_v36 = vld [vmem:[#allocation5 + $0x64c] ss:$16 sps:$4 sm:$0xff]  }
 0x128   :  { %2060 = vmatprep.mubr.bf16.mxu1 %v4456_v37  ;;  %v3917_v37 = vld [vmem:[#allocation5 + $0x448] ss:$16 sps:$4 sm:$0xff]  }
 0x129   :  { %1990 = vmatpush1.bf16.msra.mxu0 %v3893_v28 }
 0x12a   :  { %2031 = vmatpush1.bf16.msra.mxu1 %v3896_v29  ;;  %1991 = vmatprep.subr.bf16.mxu0 %v3901_v30  ;;  %v3986_v29 = vld [vmem:[#allocation8 + $0x60] ss:$8 sps:$4 sm:$0xff]  }
 0x12b   :  { %2032 = vmatprep.subr.bf16.mxu1 %v3904_v31 }
 0x12d   :  { %1992 = vmatpush1.bf16.msra.mxu0 %v3899_v32  ;;  %v3991_v32 = vld [vmem:[#allocation8 + $0x54] ss:$8 sps:$4 sm:$0xff]  }
 0x12e   :  { %2033 = vmatpush1.bf16.msra.mxu1 %v3902_v33  ;;  %1993 = vmatprep.subr.bf16.mxu0 %v3907_v34 }
 0x12f   :  { %2034 = vmatprep.subr.bf16.mxu1 %v3910_v6  ;;  %v3989_v6 = vld [vmem:[#allocation8 + $0x50] ss:$8 sps:$4 sm:$0xff]  }
 0x131   :  { %1994 = vmatpush1.bf16.msra.mxu0 %v3905_v47 }
 0x132   :  { %2035 = vmatpush1.bf16.msra.mxu1 %v3908_v7  ;;  %1995 = vmatprep.subr.bf16.mxu0 %v3913_v51  ;;  %v3994_v51 = vld [vmem:[#allocation8 + $0x44] ss:$8 sps:$4 sm:$0xff]  }
 0x133   :  { %2036 = vmatprep.subr.bf16.mxu1 %v3916_v35  ;;  %v4031_v35 = vld [vmem:[#allocation8 + $0x170] ss:$8 sps:$4 sm:$0xff]  }
 0x135   :  { %1996 = vmatpush1.bf16.msra.mxu0 %v3911_v38  ;;  %v4036_v38 = vld [vmem:[#allocation8 + $0x164] ss:$8 sps:$4 sm:$0xff]  }
 0x136   :  { %2037 = vmatpush1.bf16.msra.mxu1 %v3914_v39  ;;  %1997 = vmatprep.subr.bf16.mxu0 %v3919_v40  ;;  %v4034_v39 = vld [vmem:[#allocation8 + $0x160] ss:$8 sps:$4 sm:$0xff]   ;;  %v3997_v40 = vld [vmem:[#allocation8 + $0x34] ss:$8 sps:$4 sm:$0xff]  }
 0x137   :  { %2038 = vmatprep.subr.bf16.mxu1 %v3922_v36  ;;  %v4039_v36 = vld [vmem:[#allocation8 + $0x154] ss:$8 sps:$4 sm:$0xff]  }
 0x139   :  { %1998 = vmatpush1.bf16.msra.mxu0 %v3917_v37  ;;  %v3995_v37 = vld [vmem:[#allocation8 + $0x30] ss:$8 sps:$4 sm:$0xff]  }
 0x13a   :  { %2039 = vmatpush1.bf16.msra.mxu1 %v3920_v41  ;;  %1999 = vmatprep.subr.bf16.mxu0 %v3925_v42  ;;  %v4037_v41 = vld [vmem:[#allocation8 + $0x150] ss:$8 sps:$4 sm:$0xff]   ;;  %v4000_v42 = vld [vmem:[#allocation8 + $0x24] ss:$8 sps:$4 sm:$0xff]  }
 0x13b   :  { %2040 = vmatprep.subr.bf16.mxu1 %v3928_v43  ;;  %v4042_v43 = vld [vmem:[#allocation8 + $0x144] ss:$8 sps:$4 sm:$0xff]  }
 0x13d   :  { %2000 = vmatpush1.bf16.msra.mxu0 %v3923_v44  ;;  %v3998_v44 = vld [vmem:[#allocation8 + $0x20] ss:$8 sps:$4 sm:$0xff]  }
 0x13e   :  { %2041 = vmatpush1.bf16.msra.mxu1 %v3926_v45  ;;  %2001 = vmatprep.subr.bf16.mxu0 %v3931_v46  ;;  %v4040_v45 = vld [vmem:[#allocation8 + $0x140] ss:$8 sps:$4 sm:$0xff]   ;;  %v4003_v46 = vld [vmem:[#allocation8 + $0x14] ss:$8 sps:$4 sm:$0xff]  }
 0x13f   :  { %2042 = vmatprep.subr.bf16.mxu1 %v3934_v48  ;;  %v4045_v48 = vld [vmem:[#allocation8 + $0x134] ss:$8 sps:$4 sm:$0xff]  }
 0x141   :  { %2002 = vmatpush1.bf16.msra.mxu0 %v3929_v49  ;;  %v4001_v49 = vld [vmem:[#allocation8 + $0x10] ss:$8 sps:$4 sm:$0xff]  }
 0x142   :  { %2043 = vmatpush1.bf16.msra.mxu1 %v3932_v50  ;;  %2003 = vmatprep.subr.bf16.mxu0 %v3937_v52  ;;  %v4043_v50 = vld [vmem:[#allocation8 + $0x130] ss:$8 sps:$4 sm:$0xff]   ;;  %v4006_v52 = vld [vmem:[#allocation8 + $0x4] ss:$8 sps:$4 sm:$0xff]  }
 0x143   :  { %2044 = vmatprep.subr.bf16.mxu1 %v3940_v53  ;;  %v4048_v53 = vld [vmem:[#allocation8 + $0x124] ss:$8 sps:$4 sm:$0xff]  }
 0x145   :  { %2004 = vmatpush2.bf16.msra.mxu0 %v3935_v54  ;;  %v4004_v54 = vld [vmem:[#allocation8] ss:$8 sps:$4 sm:$0xff]  }
 0x146   :  { %2045 = vmatpush2.bf16.msra.mxu1 %v3938_v55  ;;  %2005 = vmatprep.subr.bf16.mxu0 %v3943_v56  ;;  %v4046_v55 = vld [vmem:[#allocation8 + $0x120] ss:$8 sps:$4 sm:$0xff]   ;;  %v4009_v56 = vld [vmem:[#allocation8 + $0xf4] ss:$8 sps:$4 sm:$0xff]  }
 0x147   :  { %2046 = vmatprep.subr.bf16.mxu1 %v3946_v57  ;;  %v4051_v57 = vld [vmem:[#allocation8 + $0x114] ss:$8 sps:$4 sm:$0xff]  }
 0x149   :  { %2006 = vmatpush2.bf16.msra.mxu0 %v3941_v58  ;;  %v4007_v58 = vld [vmem:[#allocation8 + $0xf0] ss:$8 sps:$4 sm:$0xff]  }
 0x14a   :  { %2047 = vmatpush2.bf16.msra.mxu1 %v3944_v59  ;;  %2007 = vmatprep.subr.bf16.mxu0 %v3949_v60  ;;  %v4049_v59 = vld [vmem:[#allocation8 + $0x110] ss:$8 sps:$4 sm:$0xff]   ;;  %v4012_v60 = vld [vmem:[#allocation8 + $0xe4] ss:$8 sps:$4 sm:$0xff]  }
 0x14b   :  { %2048 = vmatprep.subr.bf16.mxu1 %v3952_v61  ;;  %v4054_v61 = vld [vmem:[#allocation8 + $0x104] ss:$8 sps:$4 sm:$0xff]  }
 0x14d   :  { %2008 = vmatpush2.bf16.msra.mxu0 %v3947_v62  ;;  %v4010_v62 = vld [vmem:[#allocation8 + $0xe0] ss:$8 sps:$4 sm:$0xff]  }
 0x14e   :  { %2049 = vmatpush2.bf16.msra.mxu1 %v3950_v63  ;;  %2009 = vmatprep.subr.bf16.mxu0 %v3955_v0  ;;  %v4052_v63 = vld [vmem:[#allocation8 + $0x100] ss:$8 sps:$4 sm:$0xff]   ;;  %v4015_v0 = vld [vmem:[#allocation8 + $0xd4] ss:$8 sps:$4 sm:$0xff]  }
 0x14f   :  { %2050 = vmatprep.subr.bf16.mxu1 %v3958_v1  ;;  %v4057_v1 = vld [vmem:[#allocation8 + $0x1f4] ss:$8 sps:$4 sm:$0xff]  }
 0x151   :  { %2010 = vmatpush2.bf16.msra.mxu0 %v3953_v2  ;;  %v4013_v2 = vld [vmem:[#allocation8 + $0xd0] ss:$8 sps:$4 sm:$0xff]  }
 0x152   :  { %2051 = vmatpush2.bf16.msra.mxu1 %v3956_v3  ;;  %2011 = vmatprep.subr.bf16.mxu0 %v3961_v4  ;;  %v4055_v3 = vld [vmem:[#allocation8 + $0x1f0] ss:$8 sps:$4 sm:$0xff]   ;;  %v4018_v4 = vld [vmem:[#allocation8 + $0xc4] ss:$8 sps:$4 sm:$0xff]  }
 0x153   :  { %2052 = vmatprep.subr.bf16.mxu1 %v3964_v5  ;;  %v4060_v5 = vld [vmem:[#allocation8 + $0x1e4] ss:$8 sps:$4 sm:$0xff]  }
 0x155   :  { %2012 = vmatpush2.bf16.msra.mxu0 %v3959_v8  ;;  %v4016_v8 = vld [vmem:[#allocation8 + $0xc0] ss:$8 sps:$4 sm:$0xff]  }
 0x156   :  { %2053 = vmatpush2.bf16.msra.mxu1 %v3962_v9  ;;  %2013 = vmatprep.subr.bf16.mxu0 %v3967_v10  ;;  %v4058_v9 = vld [vmem:[#allocation8 + $0x1e0] ss:$8 sps:$4 sm:$0xff]   ;;  %v4021_v10 = vld [vmem:[#allocation8 + $0xb4] ss:$8 sps:$4 sm:$0xff]  }
 0x157   :  { %2054 = vmatprep.subr.bf16.mxu1 %v3970_v11  ;;  %v4063_v11 = vld [vmem:[#allocation8 + $0x1d4] ss:$8 sps:$4 sm:$0xff]  }
 0x159   :  { %2014 = vmatpush2.bf16.msra.mxu0 %v3965_v12  ;;  %v413_v12 = vlaneseq }
 0x15a   :  { %2055 = vmatpush2.bf16.msra.mxu1 %v3968_v13  ;;  %2015 = vmatprep.subr.bf16.mxu0 %v3973_v14  ;;  %v4019_v13 = vld [vmem:[#allocation8 + $0xb0] ss:$8 sps:$4 sm:$0xff]  }
 0x15b   :  { %2056 = vmatprep.subr.bf16.mxu1 %v3976_v15  ;;  %v4061_v14 = vld [vmem:[#allocation8 + $0x1d0] ss:$8 sps:$4 sm:$0xff]   ;;  %v4024_v15 = vld [vmem:[#allocation8 + $0xa4] ss:$8 sps:$4 sm:$0xff]  }
 0x15d   :  { %2016 = vmatpush2.bf16.msra.mxu0 %v3971_v18  ;;  %v4066_v18 = vld [vmem:[#allocation8 + $0x1c4] ss:$8 sps:$4 sm:$0xff]  }
 0x15e   :  { %2057 = vmatpush2.bf16.msra.mxu1 %v3974_v19  ;;  %2017 = vmatprep.subr.bf16.mxu0 %v3979_v20  ;;  %v4486_v19 = vshrl.u32 %v413_v12, 7  ;;  %v4022_v20 = vld [vmem:[#allocation8 + $0xa0] ss:$8 sps:$4 sm:$0xff]   ;;  %v4090_v12 = vld [vmem:[#allocation10 + $0x10] sm:$0xff]  }
 0x15f   :  { %2058 = vmatprep.subr.bf16.mxu1 %v3982_v21  ;;  %v4064_v21 = vld [vmem:[#allocation8 + $0x1c0] ss:$8 sps:$4 sm:$0xff]  }
 0x161   :  { %2018 = vmatpush2.bf16.msra.mxu0 %v3977_v22  ;;  %v4027_v22 = vld [vmem:[#allocation8 + $0x94] ss:$8 sps:$4 sm:$0xff]  }
 0x162   :  { %2059 = vmatpush2.bf16.msra.mxu1 %v3980_v23  ;;  %2473 = vmatprep.subr.bf16.mxu0 %v3985_v24  ;;  %v4069_v23 = vld [vmem:[#allocation8 + $0x1b4] ss:$8 sps:$4 sm:$0xff]   ;;  %v415_v24 = vsub.s32 0, %v4486_v19 }
 0x164   :  { %v4476_v27 = vpop.f32.mrf.mxu0  ;;  %2020 = vmatmul.mubr.bf16.vlgmr.msra.gmra.mxu0 %v4462_v16  ;;  %v4033_v16 = vld [vmem:[#allocation8 + $0x174] ss:$8 sps:$4 sm:$0xff]  }
 0x165   :  { %v4478_v28 = vpop.f32.mrf.mxu1  ;;  %2061 = vmatmul.mubr.bf16.vlgmr.msra.gmra.mxu1 %v4466_v17  ;;  %2474 = vmatpush1.bf16.msra.mxu0 %v3983_v25  ;;  %v3992_v17 = vld [vmem:[#allocation8 + $0x40] ss:$8 sps:$4 sm:$0xff]   ;;  %v4489_v25 = vld [vmem:[#allocation7] sm:$0xf] }
 0x166   :  { %v4482_v30 = vpop.f32.mrf.mxu0  ;;  %2475 = vmatprep.subr.bf16.mxu0 %v3988_v26  ;;  %2514 = vmatprep.subr.bf16.mxu1 %v4033_v16  ;;  %v419_v26 = vsub.s32 1, %v4486_v19 }
 0x167   :  { %v4484_v31 = vpop.f32.mrf.mxu1  ;;  %2515 = vmatpush1.bf16.msra.mxu1 %v4031_v35  ;;  %v4072_v35 = vld [vmem:[#allocation8 + $0x1a4] ss:$8 sps:$4 sm:$0xff]  }
 0x168   :  { %v1779_v33 = vpop.f32.mrf.mxu0  ;;  %2516 = vmatprep.subr.bf16.mxu1 %v4036_v38  ;;  %v4070_v38 = vld [vmem:[#allocation8 + $0x1a0] ss:$8 sps:$4 sm:$0xff]  }
 0x169   :  { %v1820_v34 = vpop.f32.mrf.mxu1  ;;  %2476 = vmatpush1.bf16.msra.mxu0 %v3986_v29  ;;  %v4025_v29 = vld [vmem:[#allocation8 + $0x90] ss:$8 sps:$4 sm:$0xff]   ;;  %v4030_v33 = vld [vmem:[#allocation8 + $0x84] ss:$8 sps:$4 sm:$0xff]  }
 0x16a   :  { %v1780_v47 = vpop.f32.mrf.mxu0  ;;  %2477 = vmatprep.subr.bf16.mxu0 %v3991_v32  ;;  %v4067_v32 = vld [vmem:[#allocation8 + $0x1b0] ss:$8 sps:$4 sm:$0xff]   ;;  %v416_v34 = vrot.slane %v4489_v25, %v415_v24 }
 0x16b   :  { %v1821_v7 = vpop.f32.mrf.mxu1  ;;  %2517 = vmatpush1.bf16.msra.mxu1 %v4034_v39  ;;  %v4028_v47 = vld [vmem:[#allocation8 + $0x80] ss:$8 sps:$4 sm:$0xff]  }
 0x16c   :  { %2518 = vmatprep.subr.bf16.mxu1 %v4039_v36  ;;  %v1776_v7 = vadd.f32 %v4476_v27, %v416_v34  ;;  %v4073_v27 = vld [vmem:[#allocation8 + $0x190] ss:$8 sps:$4 sm:$0xff]  }
 0x16d   :  { %2478 = vmatpush1.bf16.msra.mxu0 %v3989_v6  ;;  %v420_v6 = vrot.slane %v4489_v25, %v419_v26 }
 0x16e   :  { %2479 = vmatprep.subr.bf16.mxu0 %v3994_v51  ;;  %v1817_v16 = vadd.f32 %v4478_v28, %v1776_v7 }
 0x16f   :  { %2519 = vmatpush1.bf16.msra.mxu1 %v4037_v41  ;;  %v1778_v51 = vadd.f32 %v4482_v30, %v420_v6 }
 0x170   :  { %2520 = vmatprep.subr.bf16.mxu1 %v4042_v43 }
 0x171   :  { %2480 = vmatpush1.bf16.msra.mxu0 %v3992_v17 }
 0x172   :  { %2481 = vmatprep.subr.bf16.mxu0 %v3997_v40  ;;  %v1819_v40 = vadd.f32 %v4484_v31, %v1778_v51 }
 0x173   :  { %2521 = vmatpush1.bf16.msra.mxu1 %v4040_v45 }
 0x174   :  { %2522 = vmatprep.subr.bf16.mxu1 %v4045_v48 }
 0x175   :  { %2482 = vmatpush1.bf16.msra.mxu0 %v3995_v37 }
 0x176   :  { %2483 = vmatprep.subr.bf16.mxu0 %v4000_v42  ;;  %v4075_v42 = vld [vmem:[#allocation8 + $0x194] ss:$8 sps:$4 sm:$0xff]  }
 0x177   :  { %2523 = vmatpush1.bf16.msra.mxu1 %v4043_v50  ;;  %v4078_v50 = vld [vmem:[#allocation8 + $0x184] ss:$8 sps:$4 sm:$0xff]  }
 0x178   :  { %2524 = vmatprep.subr.bf16.mxu1 %v4048_v53  ;;  %v4076_v53 = vld [vmem:[#allocation8 + $0x180] ss:$8 sps:$4 sm:$0xff]  }
 0x179   :  { %2484 = vmatpush1.bf16.msra.mxu0 %v3998_v44 }
 0x17a   :  { %2485 = vmatprep.subr.bf16.mxu0 %v4003_v46 }
 0x17b   :  { %2525 = vmatpush1.bf16.msra.mxu1 %v4046_v55 }
 0x17c   :  { %2526 = vmatprep.subr.bf16.mxu1 %v4051_v57 }
 0x17d   :  { %2486 = vmatpush1.bf16.msra.mxu0 %v4001_v49 }
 0x17e   :  { %2487 = vmatprep.subr.bf16.mxu0 %v4006_v52 }
 0x17f   :  { %2527 = vmatpush1.bf16.msra.mxu1 %v4049_v59 }
 0x180   :  { %2528 = vmatprep.subr.bf16.mxu1 %v4054_v61 }
 0x181   :  { %2488 = vmatpush1.bf16.msra.mxu0 %v4004_v54 }
 0x182   :  { %2489 = vmatprep.subr.bf16.mxu0 %v4009_v56 }
 0x183   :  { %2529 = vmatpush1.bf16.msra.mxu1 %v4052_v63  ;;  %v4079_v63 = vld [vmem:[#allocation10 + $0x78] sm:$0xff]  }
 0x184   :  { %2530 = vmatprep.subr.bf16.mxu1 %v4057_v1  ;;  %v4081_v1 = vld [vmem:[#allocation10 + $0x70] sm:$0xff]  }
 0x185   :  { %2490 = vmatpush2.bf16.msra.mxu0 %v4007_v58 }
 0x186   :  { %2491 = vmatprep.subr.bf16.mxu0 %v4012_v60 }
 0x187   :  { %2531 = vmatpush2.bf16.msra.mxu1 %v4055_v3  ;;  %v4083_v3 = vld [vmem:[#allocation10 + $0x68] sm:$0xff]  }
 0x188   :  { %2532 = vmatprep.subr.bf16.mxu1 %v4060_v5  ;;  %v4085_v5 = vld [vmem:[#allocation10 + $0x60] sm:$0xff]  }
 0x189   :  { %2492 = vmatpush2.bf16.msra.mxu0 %v4010_v62 }
 0x18a   :  { %2493 = vmatprep.subr.bf16.mxu0 %v4015_v0  ;;  %v4080_v0 = vld [vmem:[#allocation10 + $0x38] sm:$0xff]  }
 0x18b   :  { %2533 = vmatpush2.bf16.msra.mxu1 %v4058_v9  ;;  %v4087_v9 = vld [vmem:[#allocation10 + $0x58] sm:$0xff]  }
 0x18c   :  { %2534 = vmatprep.subr.bf16.mxu1 %v4063_v11  ;;  %v4089_v11 = vld [vmem:[#allocation10 + $0x50] sm:$0xff]  }
 0x18d   :  { %2494 = vmatpush2.bf16.msra.mxu0 %v4013_v2  ;;  %v4082_v2 = vld [vmem:[#allocation10 + $0x30] sm:$0xff]  }
 0x18e   :  { %2495 = vmatprep.subr.bf16.mxu0 %v4018_v4  ;;  %v4084_v4 = vld [vmem:[#allocation10 + $0x28] sm:$0xff]  }
 0x18f   :  { %2535 = vmatpush2.bf16.msra.mxu1 %v4061_v14  ;;  %v427_v14 = vsub.s32 3, %v4486_v19 }
 0x190   :  { %2536 = vmatprep.subr.bf16.mxu1 %v4066_v18 }
 0x191   :  { %2496 = vmatpush2.bf16.msra.mxu0 %v4016_v8  ;;  %v4086_v8 = vld [vmem:[#allocation10 + $0x20] sm:$0xff]   ;;  %v428_v18 = vrot.slane %v4489_v25, %v427_v14 }
 0x192   :  { %2497 = vmatprep.subr.bf16.mxu0 %v4021_v10  ;;  %v4088_v10 = vld [vmem:[#allocation10 + $0x18] sm:$0xff]  }
 0x193   :  { %2537 = vmatpush2.bf16.msra.mxu1 %v4064_v21 }
 0x194   :  { %2538 = vmatprep.subr.bf16.mxu1 %v4069_v23 }
 0x195   :  { %2498 = vmatpush2.bf16.msra.mxu0 %v4019_v13  ;;  %v423_v13 = vsub.s32 2, %v4486_v19  ;;  %v4101_v19 = vld [vmem:[#allocation11 + $0x8] sm:$0xff]  }
 0x196   :  { %2499 = vmatprep.subr.bf16.mxu0 %v4024_v15 }
 0x197   :  { %2539 = vmatpush2.bf16.msra.mxu1 %v4067_v32  ;;  %v424_v15 = vrot.slane %v4489_v25, %v423_v13 }
 0x198   :  { %2540 = vmatprep.subr.bf16.mxu1 %v4072_v35 }
 0x199   :  { %2500 = vmatpush2.bf16.msra.mxu0 %v4022_v20 }
 0x19a   :  { %2501 = vmatprep.subr.bf16.mxu0 %v4027_v22 }
 0x19b   :  { %2541 = vmatpush2.bf16.msra.mxu1 %v4070_v38 }
 0x19c   :  { %2542 = vmatprep.subr.bf16.mxu1 %v4075_v42  ;;  %v4092_v42 = vld [vmem:[#allocation10 + $0x8] sm:$0xff]  }
 0x19d   :  { %2502 = vmatpush2.bf16.msra.mxu0 %v4025_v29 }
 0x19e   :  { %2503 = vmatprep.subr.bf16.mxu0 %v4030_v33 }
 0x19f   :  { %2543 = vmatpush2.bf16.msra.mxu1 %v4073_v27  ;;  %v4093_v27 = vld [vmem:[#allocation10 + $0x40] sm:$0xff]  }
 0x1a0   :  { %2544 = vmatprep.subr.bf16.mxu1 %v4078_v50  ;;  %v4098_v50 = vld [vmem:[#allocation11 + $0x20] sm:$0xff]  }
 0x1a1   :  { %2504 = vmatpush2.bf16.msra.mxu0 %v4028_v47 }
 0x1a2   :  { %3465 = vmatprep.subr.bf16.mxu0 %v4079_v63 }
 0x1a3   :  { %2545 = vmatpush2.bf16.msra.mxu1 %v4076_v53  ;;  %v2141_v53 = vld [vmem:[%s4562_s4] sm:$0x3] }
 0x1a4   :  { %v1857_v17 = vpop.f32.mrf.mxu0 }
 0x1a5   :  { %v1898_v39 = vpop.f32.mrf.mxu1  ;;  %v1858_v36 = vadd.f32 %v1857_v17, %v1817_v16 }
 0x1a6   :  { %v1859_v37 = vpop.f32.mrf.mxu0 }
 0x1a7   :  { %v1900_v41 = vpop.f32.mrf.mxu1  ;;  %v1899_v43 = vadd.f32 %v1898_v39, %v1858_v36  ;;  %v1860_v44 = vadd.f32 %v1859_v37, %v1819_v40 }
 0x1a8   :  { %v1861_v45 = vpop.f32.mrf.mxu0 }
 0x1a9   :  { %v1902_v30 = vpop.f32.mrf.mxu1  ;;  %v1901_v46 = vadd.f32 %v1900_v41, %v1860_v44  ;;  %v2069_v28 = vmax.f32 %v1899_v43, 0.0  ;;  %v4091_v41 = vld [vmem:[#allocation10 + $0x48] sm:$0xff]   ;;  %v4094_v45 = vld [vmem:[#allocation10] sm:$0xff]  }
 0x1aa   :  { %v1862_v48 = vpop.f32.mrf.mxu0 }
 0x1ab   :  { %v1903_v49 = vpop.f32.mrf.mxu1  ;;  %v2070_v52 = vmax.f32 %v1901_v46, 0.0  ;;  %v2073_v54 = vpack.c.bf16 %v2069_v28, %v2069_v28  ;;  %v4095_v46 = vld [vmem:[#allocation11 + $0x38] sm:$0xff]   ;;  %v4325_v28 = vmov 0.0   ;;  %v4096_v48 = vld [vmem:[#allocation11 + $0x30] sm:$0xff]  }
 0x1ac   :  { %3514 = vmatprep.subr.bf16.mxu1 %v4325_v28  ;;  %v4097_v49 = vld [vmem:[#allocation11 + $0x28] sm:$0xff]  }
 0x1ad   :  { %v2074_v31 = vpack.c.bf16 %v2070_v52, %v2070_v52  ;;  %v4099_v52 = vld [vmem:[#allocation11 + $0x18] sm:$0xff]  }
 0x1af   :  { %2505 = vmatprep.mubr.bf16.mxu0 %v2074_v31  ;;  %v2146_v31 = vrot.slane %v2141_v53, %v415_v24  ;;  %v4102_v24 = vld [vmem:[#allocation11] sm:$0xff]  }
 0x1b0   :  { %2506 = vmatmul.mubr.bf16.vlgmr.msra.gmra.mxu0 %v2073_v54  ;;  %v2150_v54 = vrot.slane %v2141_v53, %v419_v26  ;;  %v4103_v26 = vld [vmem:[#allocation13 + $0x38] sm:$0xff]  }
 0x1b1   :  { %3466 = vmatpush3.bf16.msra.mxu0 %v4080_v0 }
 0x1b2   :  { %3467 = vmatprep.subr.bf16.mxu0 %v4081_v1 }
 0x1b5   :  { %3468 = vmatpush3.bf16.msra.mxu0 %v4082_v2 }
 0x1b6   :  { %3469 = vmatprep.subr.bf16.mxu0 %v4083_v3  ;;  %v4100_v3 = vld [vmem:[#allocation11 + $0x10] sm:$0xff]  }
 0x1b9   :  { %3470 = vmatpush3.bf16.msra.mxu0 %v4084_v4  ;;  %v4104_v4 = vld [vmem:[#allocation13 + $0x30] sm:$0xff]  }
 0x1ba   :  { %3471 = vmatprep.subr.bf16.mxu0 %v4085_v5  ;;  %v4105_v5 = vld [vmem:[#allocation13 + $0x28] sm:$0xff]  }
 0x1bd   :  { %3472 = vmatpush3.bf16.msra.mxu0 %v4086_v8  ;;  %v4106_v8 = vld [vmem:[#allocation13 + $0x20] sm:$0xff]  }
 0x1be   :  { %3473 = vmatprep.subr.bf16.mxu0 %v4087_v9  ;;  %v4107_v9 = vld [vmem:[#allocation13 + $0x18] sm:$0xff]  }
 0x1c1   :  { %3474 = vmatpush3.bf16.msra.mxu0 %v4088_v10  ;;  %v4108_v10 = vld [vmem:[#allocation13 + $0x10] sm:$0xff]  }
 0x1c2   :  { %3475 = vmatprep.subr.bf16.mxu0 %v4089_v11 }
 0x1c5   :  { %3476 = vmatpush3.bf16.msra.mxu0 %v4090_v12  ;;  %v3421_v12 = vld [vmem:[%s4564_s6] ss:$0 sm:$0xff] }
 0x1c6   :  { %3477 = vmatprep.subr.bf16.mxu0 %v4091_v41  ;;  %v3447_v41 = vld [vmem:[%s4568_s10] ss:$0 sm:$0xff]  ;;  %s4279_s10 = scalar_lea.vmem %s3081_s18, 128 }
 0x1c7   :  { %p4280_p12 = scmp.ne.s32.totalorder %s3081_s18, %s4279_s10  ;;  %p4285_p0 = scmp.lt.s32.totalorder %s4279_s10, %s4279_s10 }
 0x1c9   :  { %3478 = vmatpush3.bf16.msra.mxu0 %v4092_v42  ;;  %p4286_p1 = por %p4285_p0, %p4284_p13 }
 0x1ca   :  { %3479 = vmatprep.subr.bf16.mxu0 %v4093_v27 }
 0x1cb   :  { %p4287_p2 = pnand %p4286_p1, %p4280_p12 }
 0x1cd   :  { %3480 = vmatpush3.bf16.msra.mxu0 %v4094_v45 }
 0x1ce   :  { %3534 = vmatprep.subr.bf16.mxu0 %v4325_v28 }
 0x1e4   :  { %v1939_v55 = vpop.f32.mrf.mxu0 }
 0x1e5   :  { %v1980_v56 = vpop.f32.mrf.mxu1  ;;  %v1940_v20 = vadd.f32 %v1939_v55, %v424_v15 }
 0x1e6   :  { %v1941_v57 = vpop.f32.mrf.mxu0 }
 0x1e7   :  { %v1982_v58 = vpop.f32.mrf.mxu1  ;;  %v1942_v21 = vadd.f32 %v1941_v57, %v428_v18  ;;  %v1981_v22 = vadd.f32 %v1980_v56, %v1940_v20 }
 0x1e8   :  { %v1943_v59 = vpop.f32.mrf.mxu0 }
 0x1e9   :  { %v1984_v60 = vpop.f32.mrf.mxu1  ;;  %v1983_v32 = vadd.f32 %v1982_v58, %v1942_v21 }
 0x1ea   :  { %v1944_v61 = vpop.f32.mrf.mxu0 }
 0x1eb   :  { %v1985_v62 = vpop.f32.mrf.mxu1 }
 0x224   :  { %v2021_v23 = vpop.f32.mrf.mxu0 }
 0x225   :  { %v2062_v29 = vpop.f32.mrf.mxu1  ;;  %v2022_v33 = vadd.f32 %v2021_v23, %v1981_v22  ;;  %v4109_v23 = vld [vmem:[#allocation13 + $0x8] sm:$0xff]  }
 0x226   :  { %v2023_v34 = vpop.f32.mrf.mxu0 }
 0x227   :  { %v2064_v6 = vpop.f32.mrf.mxu1  ;;  %v2063_v47 = vadd.f32 %v2062_v29, %v2022_v33  ;;  %v2024_v7 = vadd.f32 %v2023_v34, %v1983_v32  ;;  %v4110_v29 = vld [vmem:[#allocation13] sm:$0xff]   ;;  %v4111_v32 = vld [vmem:[#allocation14 + $0x38] sm:$0xff]   ;;  %v4112_v33 = vld [vmem:[#allocation14 + $0x30] sm:$0xff]  }
 0x228   :  { %v2025_v51 = vpop.f32.mrf.mxu0  ;;  %v4113_v34 = vld [vmem:[#allocation14 + $0x28] sm:$0xff]  }
 0x229   :  { %v2066_v35 = vpop.f32.mrf.mxu1  ;;  %v2065_v16 = vadd.f32 %v2064_v6, %v2024_v7  ;;  %v2071_v38 = vmax.f32 %v2063_v47, 0.0  ;;  %v4114_v6 = vld [vmem:[#allocation14 + $0x20] sm:$0xff]   ;;  %v4115_v47 = vld [vmem:[#allocation14 + $0x18] sm:$0xff]   ;;  %v4116_v7 = vld [vmem:[#allocation14 + $0x10] sm:$0xff]  }
 0x22a   :  { %v2026_v17 = vpop.f32.mrf.mxu0  ;;  %v3438_v51 = vld [vmem:[%s4566_s8] ss:$0 sm:$0xff] }
 0x22b   :  { %v2067_v39 = vpop.f32.mrf.mxu1  ;;  %v2072_v40 = vmax.f32 %v2065_v16, 0.0  ;;  %v2075_v25 = vpack.c.bf16 %v2071_v38, %v2071_v38 }
 0x22d   :  { %v2076_v36 = vpack.c.bf16 %v2072_v40, %v2072_v40 }
 0x22f   :  { %2546 = vmatprep.mubr.bf16.mxu1 %v2076_v36 }
 0x230   :  { %2547 = vmatmul.mubr.bf16.vlgmr.msra.gmra.mxu1 %v2075_v25  ;;  %v4117_v25 = vld [vmem:[#allocation14 + $0x8] sm:$0xff]  }
 0x231   :  { %3515 = vmatpush3.bf16.msra.mxu1 %v4095_v46  ;;  %3530 = vmatprep.mubr.msk.bf16.mxu1 %vm4326_vm0, %v4325_v28 }
 0x232   :  { %3516 = vmatprep.subr.bf16.mxu1 %v4325_v28 }
 0x235   :  { %3517 = vmatpush3.bf16.msra.mxu1 %v4096_v48  ;;  %v3456_v48 = vld [vmem:[%s4570_s12] ss:$0 sm:$0xff] }
 0x236   :  { %3518 = vmatprep.subr.bf16.mxu1 %v4325_v28 }
 0x239   :  { %3519 = vmatpush3.bf16.msra.mxu1 %v4097_v49 }
 0x23a   :  { %3520 = vmatprep.subr.bf16.mxu1 %v4325_v28 }
 0x23d   :  { %3521 = vmatpush3.bf16.msra.mxu1 %v4098_v50 }
 0x23e   :  { %3522 = vmatprep.subr.bf16.mxu1 %v4325_v28 }
 0x241   :  { %3523 = vmatpush3.bf16.msra.mxu1 %v4099_v52 }
 0x242   :  { %3524 = vmatprep.subr.bf16.mxu1 %v4325_v28 }
 0x245   :  { %3525 = vmatpush3.bf16.msra.mxu1 %v4100_v3 }
 0x246   :  { %3526 = vmatprep.subr.bf16.mxu1 %v4325_v28 }
 0x249   :  { %3527 = vmatpush3.bf16.msra.mxu1 %v4101_v19 }
 0x24a   :  { %3528 = vmatprep.subr.bf16.mxu1 %v4325_v28 }
 0x24d   :  { %3529 = vmatpush3.bf16.msra.mxu1 %v4102_v24 }
 0x24e   :  { %3554 = vmatprep.subr.bf16.mxu1 %v4325_v28 }
 0x270   :  { %v2507_v37 = vpop.f32.mrf.mxu0 }
 0x271   :  { %v2508_v55 = vadd.f32 %v2507_v37, %v2146_v31  ;;  %v4118_v37 = vld [vmem:[#allocation14] sm:$0xff]  }
 0x272   :  { %v2509_v43 = vpop.f32.mrf.mxu0 }
 0x273   :  { %v2510_v57 = vadd.f32 %v2509_v43, %v2150_v54 }
 0x274   :  { %v2511_v44 = vpop.f32.mrf.mxu0 }
 0x276   :  { %v2512_v30 = vpop.f32.mrf.mxu0 }
 0x2f0   :  { %v2548_v56 = vpop.f32.mrf.mxu1 }
 0x2f1   :  { %v2549_v58 = vadd.f32 %v2548_v56, %v2508_v55 }
 0x2f2   :  { %v2550_v59 = vpop.f32.mrf.mxu1 }
 0x2f3   :  { %v2551_v60 = vadd.f32 %v2550_v59, %v2510_v57  ;;  %v2555_v61 = vmax.f32 %v2549_v58, 0.0 }
 0x2f4   :  { %v2552_v62 = vpop.f32.mrf.mxu1 }
 0x2f5   :  { %v2556_v63 = vmax.f32 %v2551_v60, 0.0  ;;  %v2557_v2 = vpack.c.bf16 %v2555_v61, %v2555_v61 }
 0x2f6   :  { %v2553_v0 = vpop.f32.mrf.mxu1 }
 0x2f7   :  { %v2558_v1 = vpack.c.bf16 %v2556_v63, %v2556_v63 }
 0x2f9   :  { %2726 = vmatprep.mubr.bf16.mxu0 %v2558_v1 }
 0x2fa   :  { %2727 = vmatmul.mubr.bf16.vlgmr.msra.gmra.mxu0 %v2557_v2 }
 0x2fb   :  { %3550 = vmatprep.mubr.msk.bf16.mxu0 %vm4326_vm0, %v4325_v28  ;;  %3535 = vmatpush3.bf16.msra.mxu0 %v4103_v26 }
 0x2fc   :  { %3536 = vmatprep.subr.bf16.mxu0 %v4325_v28 }
 0x2ff   :  { %3537 = vmatpush3.bf16.msra.mxu0 %v4104_v4 }
 0x300   :  { %3538 = vmatprep.subr.bf16.mxu0 %v4325_v28 }
 0x303   :  { %3539 = vmatpush3.bf16.msra.mxu0 %v4105_v5 }
 0x304   :  { %3540 = vmatprep.subr.bf16.mxu0 %v4325_v28 }
 0x307   :  { %3541 = vmatpush3.bf16.msra.mxu0 %v4106_v8 }
 0x308   :  { %3542 = vmatprep.subr.bf16.mxu0 %v4325_v28 }
 0x30b   :  { %3543 = vmatpush3.bf16.msra.mxu0 %v4107_v9 }
 0x30c   :  { %3544 = vmatprep.subr.bf16.mxu0 %v4325_v28 }
 0x30f   :  { %3545 = vmatpush3.bf16.msra.mxu0 %v4108_v10 }
 0x310   :  { %3546 = vmatprep.subr.bf16.mxu0 %v4325_v28 }
 0x313   :  { %3547 = vmatpush3.bf16.msra.mxu0 %v4109_v23 }
 0x314   :  { %3548 = vmatprep.subr.bf16.mxu0 %v4325_v28 }
 0x317   :  { %3549 = vmatpush3.bf16.msra.mxu0 %v4110_v29 }
 0x3ba   :  { %v3481_v11 = vpop.f32.mrf.mxu0 }
 0x3bc   :  { %v3482_v13 = vpop.f32.mrf.mxu0 }
 0x3bd   :  { %v3483_v14 = vadd.f32 %v3482_v13, %v3481_v11 }
 0x3be   :  { %v3484_v15 = vpop.f32.mrf.mxu0 }
 0x3bf   :  { %v2729_v18 = vadd.f32 %v3483_v14, %v3421_v12 }
 0x3c0   :  { %v3485_v20 = vpop.f32.mrf.mxu0 }
 0x3c1   :  { %v2734_v21 = vmax.f32 %v2729_v18, 0.0 }
 0x3c3   :  { %v2735_v22 = vpack.c.bf16 %v2734_v21, %v2734_v21 }
 0x3c5   :  { %3531 = vmatmul.mubr.bf16.vlgmr.msra.gmra.mxu1 %v2735_v22 }
 0x3c6   :  { %3570 = vmatprep.mubr.msk.bf16.mxu1 %vm4326_vm0, %v4325_v28  ;;  %3555 = vmatpush3.bf16.msra.mxu1 %v4111_v32 }
 0x3c7   :  { %3556 = vmatprep.subr.bf16.mxu1 %v4325_v28 }
 0x3ca   :  { %3557 = vmatpush3.bf16.msra.mxu1 %v4112_v33 }
 0x3cb   :  { %3558 = vmatprep.subr.bf16.mxu1 %v4325_v28 }
 0x3ce   :  { %3559 = vmatpush3.bf16.msra.mxu1 %v4113_v34 }
 0x3cf   :  { %3560 = vmatprep.subr.bf16.mxu1 %v4325_v28 }
 0x3d2   :  { %3561 = vmatpush3.bf16.msra.mxu1 %v4114_v6 }
 0x3d3   :  { %3562 = vmatprep.subr.bf16.mxu1 %v4325_v28 }
 0x3d6   :  { %3563 = vmatpush3.bf16.msra.mxu1 %v4115_v47 }
 0x3d7   :  { %3564 = vmatprep.subr.bf16.mxu1 %v4325_v28 }
 0x3da   :  { %3565 = vmatpush3.bf16.msra.mxu1 %v4116_v7 }
 0x3db   :  { %3566 = vmatprep.subr.bf16.mxu1 %v4325_v28 }
 0x3de   :  { %3567 = vmatpush3.bf16.msra.mxu1 %v4117_v25 }
 0x3df   :  { %3568 = vmatprep.subr.bf16.mxu1 %v4325_v28 }
 0x3e2   :  { %3569 = vmatpush3.bf16.msra.mxu1 %v4118_v37 }
 0x485   :  { %v2841_v35 = vpop.f32.mrf.mxu1 }
 0x486   :  { %v2842_v16 = vadd.f32 %v3438_v51, %v2841_v35 }
 0x487   :  { %v3532_v38 = vpop.f32.mrf.mxu1 }
 0x488   :  { %v2847_v17 = vmax.f32 %v2842_v16, 0.0 }
 0x489   :  { %v2844_v39 = vpop.f32.mrf.mxu1 }
 0x48a   :  { %v2848_v40 = vpack.c.bf16 %v2847_v17, %v2847_v17 }
 0x48b   :  { %v3533_v36 = vpop.f32.mrf.mxu1 }
 0x48c   :  { %3551 = vmatmul.mubr.bf16.vlgmr.msra.gmra.mxu0 %v2848_v40 }
 0x54c   :  { %v2954_v42 = vpop.f32.mrf.mxu0 }
 0x54d   :  { %v2955_v43 = vadd.f32 %v3447_v41, %v2954_v42 }
 0x54e   :  { %v3552_v44 = vpop.f32.mrf.mxu0 }
 0x54f   :  { %v2960_v27 = vmax.f32 %v2955_v43, 0.0 }
 0x550   :  { %v2957_v45 = vpop.f32.mrf.mxu0 }
 0x551   :  { %v2961_v30 = vpack.c.bf16 %v2960_v27, %v2960_v27 }
 0x552   :  { %v3553_v46 = vpop.f32.mrf.mxu0 }
 0x553   :  { %3571 = vmatmul.mubr.bf16.vlgmr.msra.gmra.mxu1 %v2961_v30 }
 0x613   :  { %v3067_v28 = vpop.f32.mrf.mxu1 }
 0x614   :  { %v3068_v49 = vadd.f32 %v3456_v48, %v3067_v28 }
 0x615   :  { %v3572_v50 = vpop.f32.mrf.mxu1 }
 0x616   :  { %3073 = vst [vmem:[#allocation16] sm:$0xff] %v3068_v49 }
 0x617   :  { %v3070_v52 = vpop.f32.mrf.mxu1 }
 0x618   :  { %4290 = shalt.err (!%p4287_p2)
}
 0x619   :  { %3083 = dma.vmem_to_hbm [thread:$0]  %s3081_s18, 128, %s4571_s13, [#allocation4]   ;;  %v3573_v53 = vpop.f32.mrf.mxu1 }
 0x61a   :  { %4309 = dma.done.wait [#allocation4], 128  }
 0x61b   :  { %4310 = vsyncadd [#allocation4], 4294967168 }
 0x61c   :  { %3087 = vsyncpa [#allocation3], 1 }
 0x61d   :  { %3088 = vsyncpa [#allocation6], 1 }
 0x61e   :  { %3089 = vsyncpa [#allocation9], 1 }
 0x61f   :  { %3090 = vsyncpa [#allocation12], 1 }
 0x620   :  { %3091 = vsyncpa [#allocation15], 1 }
 0x621   :  { %3092 = vsyncpa [#allocation4], 1 }

</bundles_post_ra>
